<compile_context>
chip_gen: v7x
topology: tpu7x:2x2x1
jax: 0.10.0
libtpu: 0.0.40
codegen_flags: <defaults>
</compile_context>

<pallas_src>
import jax
import jax.numpy as jnp
from jax.experimental import pallas as pl
from jax.experimental.pallas import tpu as pltpu


def _residual_block_kernel(x_ref, w1_ref, b1_ref, w2_ref, b2_ref, o_ref, p_s):
    # x_ref : (1, H, W, C)   unpadded input tile (one batch element), float32
    # w*_ref: (9, C, C)      conv taps, k = dy*3 + dx, laid out (Cin, Cout)
    # b*_ref: (1, 1, C)      float32 biases
    # o_ref : (1, H, W, C)   float32 output
    # p_s   : (H+2, W+2, C)  VMEM scratch: zero-padded buffer, reused for both convs
    _, H, W, C = x_ref.shape
    Hp, Wp = H + 2, W + 2
    cdt = p_s.dtype

    # Refresh only the 1-pixel zero border of the padded scratch (cheap strip
    # stores every step; no full-buffer zero, no one-time-init hazard on megacore).
    zrow = jnp.zeros((1, Wp, C), cdt)
    zcol = jnp.zeros((Hp, 1, C), cdt)
    p_s[0:1, :, :] = zrow
    p_s[Hp - 1:Hp, :, :] = zrow
    p_s[:, 0:1, :] = zcol
    p_s[:, Wp - 1:Wp, :] = zcol

    # Load the input tile once: feeds both the padded scratch and the residual.
    x = x_ref[0]                                     # (H, W, C) float32
    p_s[1:H + 1, 1:W + 1, :] = x.astype(cdt)         # interior (border already zero)

    def conv3x3(w_ref):
        # 3x3 conv over p_s as 9 (H*W, Cin) @ (Cin, Cout) matmuls, f32 accumulation.
        # dx-major: one sliced load + one flatten per dx; the dy shifts are then
        # contiguous row-slices of the flattened value (no further reshapes).
        acc = None
        for dx in range(3):
            cols = p_s[:, dx:dx + W, :]              # (Hp, W, C) sliced load
            flat = cols.reshape(Hp * W, C)           # one flatten per dx
            for dy in range(3):
                lhs = flat[dy * W:(dy + H) * W]      # (H*W, C) contiguous rows
                tap = jnp.dot(lhs, w_ref[dy * 3 + dx],
                              preferred_element_type=jnp.float32)
                acc = tap if acc is None else acc + tap
        return acc                                   # (H*W, C) float32

    # ---- conv1 + bias + ReLU, re-padded into the SAME scratch for conv2 ----
    y1 = jnp.maximum(conv3x3(w1_ref) + b1_ref[0], 0.0)
    p_s[1:H + 1, 1:W + 1, :] = y1.reshape(H, W, C).astype(cdt)

    # ---- conv2 + bias, residual add (f32), ReLU ----
    y2 = conv3x3(w2_ref).reshape(H, W, C) + b2_ref[...]
    o_ref[0] = jnp.maximum(x + y2, 0.0)


def residual_block(x_nchw, w1, b1, w2, b2, *, compute_dtype=jnp.float32):
    """x_nchw: (B, C, H, W); w*: (C, C, 3, 3) torch OIHW layout; b*: (C,).

    `compute_dtype` selects the MXU operand dtype (float32 or bfloat16);
    accumulation and the residual path always stay float32.
    """
    B, C, H, W = x_nchw.shape
    x = jnp.transpose(x_nchw, (0, 2, 3, 1)).astype(jnp.float32)       # NHWC

    def to_taps(w):  # (Cout, Cin, kh, kw) -> (9, Cin, Cout), k = dy*3 + dx
        return jnp.transpose(w, (2, 3, 1, 0)).reshape(9, C, C).astype(compute_dtype)

    w1t, w2t = to_taps(w1), to_taps(w2)
    b1r = b1.reshape(1, 1, C).astype(jnp.float32)
    b2r = b2.reshape(1, 1, C).astype(jnp.float32)

    out_nhwc = pl.pallas_call(
        _residual_block_kernel,
        out_shape=jax.ShapeDtypeStruct((B, H, W, C), jnp.float32),
        grid_spec=pltpu.PrefetchScalarGridSpec(
            num_scalar_prefetch=0,
            grid=(B,),
            in_specs=[
                pl.BlockSpec((1, H, W, C), lambda b: (b, 0, 0, 0)),
                pl.BlockSpec((9, C, C), lambda b: (0, 0, 0)),
                pl.BlockSpec((1, 1, C), lambda b: (0, 0, 0)),
                pl.BlockSpec((9, C, C), lambda b: (0, 0, 0)),
                pl.BlockSpec((1, 1, C), lambda b: (0, 0, 0)),
            ],
            out_specs=pl.BlockSpec((1, H, W, C), lambda b: (b, 0, 0, 0)),
            scratch_shapes=[
                pltpu.VMEM((H + 2, W + 2, C), compute_dtype),   # shared padded scratch
            ],
        ),
        compiler_params=pltpu.CompilerParams(dimension_semantics=("parallel",)),
    )(x, w1t, b1r, w2t, b2r)

    return jnp.transpose(out_nhwc, (0, 3, 1, 2))                       # back to NCHW


def _reference(x, w1, b1, w2, b2):
    dn = ("NCHW", "OIHW", "NCHW")
    y = jax.lax.conv_general_dilated(x, w1, (1, 1), ((1, 1), (1, 1)),
                                     dimension_numbers=dn)
    y = jax.nn.relu(y + b1.reshape(1, -1, 1, 1))
    y = jax.lax.conv_general_dilated(y, w2, (1, 1), ((1, 1), (1, 1)),
                                     dimension_numbers=dn) + b2.reshape(1, -1, 1, 1)
    return jax.nn.relu(x + y)


if __name__ == "__main__":
    B, C, H, W = 2, 4, 16, 16
    key = jax.random.PRNGKey(0)
    kx, kw1, kb1, kw2, kb2 = jax.random.split(key, 5)

    x = jax.random.normal(kx, (B, C, H, W), dtype=jnp.float32)
    # Deterministic synthetic parameters (torch Conv2d shapes: (Cout, Cin, 3, 3), (Cout,))
    scale = 1.0 / (C * 9) ** 0.5
    w1 = jax.random.uniform(kw1, (C, C, 3, 3), jnp.float32, -scale, scale)
    b1 = jax.random.uniform(kb1, (C,), jnp.float32, -scale, scale)
    w2 = jax.random.uniform(kw2, (C, C, 3, 3), jnp.float32, -scale, scale)
    b2 = jax.random.uniform(kb2, (C,), jnp.float32, -scale, scale)

    ref = jax.block_until_ready(_reference(x, w1, b1, w2, b2))

    # f32 MXU path: matches the PyTorch module semantics to tight tolerance.
    out = jax.block_until_ready(residual_block(x, w1, b1, w2, b2))
    assert out.shape == (B, C, H, W)
    assert jnp.allclose(out, ref, atol=1e-4, rtol=1e-4), "f32 kernel mismatch vs reference"

    # bf16 MXU operands with f32 accumulation; looser tolerance.
    out_bf16 = jax.block_until_ready(
        residual_block(x, w1, b1, w2, b2, compute_dtype=jnp.bfloat16))
    assert jnp.allclose(out_bf16, ref, atol=3e-2, rtol=3e-2), "bf16 kernel mismatch vs reference"

    print("KERNEL_OK")
</pallas_src>

<mosaic_0001>
module attributes {stable_mosaic.version = 11 : i64} {
  func.func @_residual_block_kernel(%arg0: i32, %arg1: memref<1x16x16x4xf32, #tpu.memory_space<vmem>>, %arg2: memref<9x4x4xf32, #tpu.memory_space<vmem>>, %arg3: memref<1x1x4xf32, #tpu.memory_space<vmem>>, %arg4: memref<9x4x4xf32, #tpu.memory_space<vmem>>, %arg5: memref<1x1x4xf32, #tpu.memory_space<vmem>>, %arg6: memref<1x16x16x4xf32, #tpu.memory_space<vmem>>, %arg7: memref<18x18x4xf32, #tpu.memory_space<vmem>>) attributes {dimension_semantics = [#tpu.dimension_semantics<parallel>], iteration_bounds = array<i64: 2>, scalar_prefetch = 0 : i64, scratch_operands = 1 : i64, tpu.core_type = #tpu.core_type<tc>, window_params = [{transform_indices = @transform_0, window_bounds = array<i64: 1, 16, 16, 4>}, {pipeline_mode = #tpu.pipeline_mode<synchronous>, transform_indices = @transform_1, window_bounds = array<i64: 9, 4, 4>}, {pipeline_mode = #tpu.pipeline_mode<synchronous>, transform_indices = @transform_2, window_bounds = array<i64: 1, 1, 4>}, {pipeline_mode = #tpu.pipeline_mode<synchronous>, transform_indices = @transform_3, window_bounds = array<i64: 9, 4, 4>}, {pipeline_mode = #tpu.pipeline_mode<synchronous>, transform_indices = @transform_4, window_bounds = array<i64: 1, 1, 4>}, {transform_indices = @transform_5, window_bounds = array<i64: 1, 16, 16, 4>}]} {
    %cst = arith.constant 0.000000e+00 : f32
    %0 = vector.broadcast %cst : f32 to vector<1x18x4xf32>
    %cst_0 = arith.constant 0.000000e+00 : f32
    %1 = vector.broadcast %cst_0 : f32 to vector<18x1x4xf32>
    %c0 = arith.constant 0 : index
    %c0_1 = arith.constant 0 : index
    %c0_2 = arith.constant 0 : index
    %2 = vector.load %arg7[%c0, %c0_1, %c0_2] : memref<18x18x4xf32, #tpu.memory_space<vmem>>, vector<1x18x4xf32>
    tpu.vector_store %arg7[%c0, %c0_1, %c0_2], %0 {strides = array<i32>} : memref<18x18x4xf32, #tpu.memory_space<vmem>>, vector<1x18x4xf32>,
    %c17 = arith.constant 17 : index
    %c0_3 = arith.constant 0 : index
    %c0_4 = arith.constant 0 : index
    %3 = vector.load %arg7[%c17, %c0_3, %c0_4] : memref<18x18x4xf32, #tpu.memory_space<vmem>>, vector<1x18x4xf32>
    tpu.vector_store %arg7[%c17, %c0_3, %c0_4], %0 {strides = array<i32>} : memref<18x18x4xf32, #tpu.memory_space<vmem>>, vector<1x18x4xf32>,
    %c0_5 = arith.constant 0 : index
    %c0_6 = arith.constant 0 : index
    %c0_7 = arith.constant 0 : index
    %4 = vector.load %arg7[%c0_5, %c0_6, %c0_7] : memref<18x18x4xf32, #tpu.memory_space<vmem>>, vector<18x1x4xf32>
    tpu.vector_store %arg7[%c0_5, %c0_6, %c0_7], %1 {strides = array<i32>} : memref<18x18x4xf32, #tpu.memory_space<vmem>>, vector<18x1x4xf32>,
    %c0_8 = arith.constant 0 : index
    %c17_9 = arith.constant 17 : index
    %c0_10 = arith.constant 0 : index
    %5 = vector.load %arg7[%c0_8, %c17_9, %c0_10] : memref<18x18x4xf32, #tpu.memory_space<vmem>>, vector<18x1x4xf32>
    tpu.vector_store %arg7[%c0_8, %c17_9, %c0_10], %1 {strides = array<i32>} : memref<18x18x4xf32, #tpu.memory_space<vmem>>, vector<18x1x4xf32>,
    %c0_11 = arith.constant 0 : index
    %c0_12 = arith.constant 0 : index
    %c0_13 = arith.constant 0 : index
    %c0_14 = arith.constant 0 : index
    %6 = vector.load %arg1[%c0_11, %c0_12, %c0_13, %c0_14] : memref<1x16x16x4xf32, #tpu.memory_space<vmem>>, vector<1x16x16x4xf32>
    %7 = vector.shape_cast %6 : vector<1x16x16x4xf32> to vector<16x16x4xf32>
    %c1 = arith.constant 1 : index
    %c1_15 = arith.constant 1 : index
    %c0_16 = arith.constant 0 : index
    %8 = vector.load %arg7[%c1, %c1_15, %c0_16] : memref<18x18x4xf32, #tpu.memory_space<vmem>>, vector<16x16x4xf32>
    tpu.vector_store %arg7[%c1, %c1_15, %c0_16], %7 {strides = array<i32>} : memref<18x18x4xf32, #tpu.memory_space<vmem>>, vector<16x16x4xf32>,
    %c0_17 = arith.constant 0 : index
    %c0_18 = arith.constant 0 : index
    %c0_19 = arith.constant 0 : index
    %9 = vector.load %arg7[%c0_17, %c0_18, %c0_19] : memref<18x18x4xf32, #tpu.memory_space<vmem>>, vector<18x16x4xf32>
    %10 = vector.shape_cast %9 : vector<18x16x4xf32> to vector<288x4xf32>
    %11 = vector.extract_strided_slice %10 {offsets = [0, 0], sizes = [256, 4], strides = [1, 1]} : vector<288x4xf32> to vector<256x4xf32>
    %c0_20 = arith.constant 0 : index
    %c0_21 = arith.constant 0 : index
    %c0_22 = arith.constant 0 : index
    %12 = vector.load %arg2[%c0_20, %c0_21, %c0_22] : memref<9x4x4xf32, #tpu.memory_space<vmem>>, vector<1x4x4xf32>
    %13 = vector.shape_cast %12 : vector<1x4x4xf32> to vector<4x4xf32>
    %cst_23 = arith.constant dense<0.000000e+00> : vector<256x4xf32>
    %14 = tpu.matmul %11, %13, %cst_23 {dimension_numbers = #tpu.dot_dimension_numbers<[1], [0], [0], [1], [0, 0, 1, 1], [], []>} : vector<256x4xf32>, vector<4x4xf32>, vector<256x4xf32> -> vector<256x4xf32>
    %15 = vector.extract_strided_slice %10 {offsets = [16, 0], sizes = [256, 4], strides = [1, 1]} : vector<288x4xf32> to vector<256x4xf32>
    %c3 = arith.constant 3 : index
    %c0_24 = arith.constant 0 : index
    %c0_25 = arith.constant 0 : index
    %16 = vector.load %arg2[%c3, %c0_24, %c0_25] : memref<9x4x4xf32, #tpu.memory_space<vmem>>, vector<1x4x4xf32>
    %17 = vector.shape_cast %16 : vector<1x4x4xf32> to vector<4x4xf32>
    %cst_26 = arith.constant dense<0.000000e+00> : vector<256x4xf32>
    %18 = tpu.matmul %15, %17, %cst_26 {dimension_numbers = #tpu.dot_dimension_numbers<[1], [0], [0], [1], [0, 0, 1, 1], [], []>} : vector<256x4xf32>, vector<4x4xf32>, vector<256x4xf32> -> vector<256x4xf32>
    %19 = arith.addf %14, %18 : vector<256x4xf32>
    %20 = vector.extract_strided_slice %10 {offsets = [32, 0], sizes = [256, 4], strides = [1, 1]} : vector<288x4xf32> to vector<256x4xf32>
    %c6 = arith.constant 6 : index
    %c0_27 = arith.constant 0 : index
    %c0_28 = arith.constant 0 : index
    %21 = vector.load %arg2[%c6, %c0_27, %c0_28] : memref<9x4x4xf32, #tpu.memory_space<vmem>>, vector<1x4x4xf32>
    %22 = vector.shape_cast %21 : vector<1x4x4xf32> to vector<4x4xf32>
    %cst_29 = arith.constant dense<0.000000e+00> : vector<256x4xf32>
    %23 = tpu.matmul %20, %22, %cst_29 {dimension_numbers = #tpu.dot_dimension_numbers<[1], [0], [0], [1], [0, 0, 1, 1], [], []>} : vector<256x4xf32>, vector<4x4xf32>, vector<256x4xf32> -> vector<256x4xf32>
    %24 = arith.addf %19, %23 : vector<256x4xf32>
    %c0_30 = arith.constant 0 : index
    %c1_31 = arith.constant 1 : index
    %c0_32 = arith.constant 0 : index
    %25 = vector.load %arg7[%c0_30, %c1_31, %c0_32] : memref<18x18x4xf32, #tpu.memory_space<vmem>>, vector<18x16x4xf32>
    %26 = vector.shape_cast %25 : vector<18x16x4xf32> to vector<288x4xf32>
    %27 = vector.extract_strided_slice %26 {offsets = [0, 0], sizes = [256, 4], strides = [1, 1]} : vector<288x4xf32> to vector<256x4xf32>
    %c1_33 = arith.constant 1 : index
    %c0_34 = arith.constant 0 : index
    %c0_35 = arith.constant 0 : index
    %28 = vector.load %arg2[%c1_33, %c0_34, %c0_35] : memref<9x4x4xf32, #tpu.memory_space<vmem>>, vector<1x4x4xf32>
    %29 = vector.shape_cast %28 : vector<1x4x4xf32> to vector<4x4xf32>
    %cst_36 = arith.constant dense<0.000000e+00> : vector<256x4xf32>
    %30 = tpu.matmul %27, %29, %cst_36 {dimension_numbers = #tpu.dot_dimension_numbers<[1], [0], [0], [1], [0, 0, 1, 1], [], []>} : vector<256x4xf32>, vector<4x4xf32>, vector<256x4xf32> -> vector<256x4xf32>
    %31 = arith.addf %24, %30 : vector<256x4xf32>
    %32 = vector.extract_strided_slice %26 {offsets = [16, 0], sizes = [256, 4], strides = [1, 1]} : vector<288x4xf32> to vector<256x4xf32>
    %c4 = arith.constant 4 : index
    %c0_37 = arith.constant 0 : index
    %c0_38 = arith.constant 0 : index
    %33 = vector.load %arg2[%c4, %c0_37, %c0_38] : memref<9x4x4xf32, #tpu.memory_space<vmem>>, vector<1x4x4xf32>
    %34 = vector.shape_cast %33 : vector<1x4x4xf32> to vector<4x4xf32>
    %cst_39 = arith.constant dense<0.000000e+00> : vector<256x4xf32>
    %35 = tpu.matmul %32, %34, %cst_39 {dimension_numbers = #tpu.dot_dimension_numbers<[1], [0], [0], [1], [0, 0, 1, 1], [], []>} : vector<256x4xf32>, vector<4x4xf32>, vector<256x4xf32> -> vector<256x4xf32>
    %36 = arith.addf %31, %35 : vector<256x4xf32>
    %37 = vector.extract_strided_slice %26 {offsets = [32, 0], sizes = [256, 4], strides = [1, 1]} : vector<288x4xf32> to vector<256x4xf32>
    %c7 = arith.constant 7 : index
    %c0_40 = arith.constant 0 : index
    %c0_41 = arith.constant 0 : index
    %38 = vector.load %arg2[%c7, %c0_40, %c0_41] : memref<9x4x4xf32, #tpu.memory_space<vmem>>, vector<1x4x4xf32>
    %39 = vector.shape_cast %38 : vector<1x4x4xf32> to vector<4x4xf32>
    %cst_42 = arith.constant dense<0.000000e+00> : vector<256x4xf32>
    %40 = tpu.matmul %37, %39, %cst_42 {dimension_numbers = #tpu.dot_dimension_numbers<[1], [0], [0], [1], [0, 0, 1, 1], [], []>} : vector<256x4xf32>, vector<4x4xf32>, vector<256x4xf32> -> vector<256x4xf32>
    %41 = arith.addf %36, %40 : vector<256x4xf32>
    %c0_43 = arith.constant 0 : index
    %c2 = arith.constant 2 : index
    %c0_44 = arith.constant 0 : index
    %42 = vector.load %arg7[%c0_43, %c2, %c0_44] : memref<18x18x4xf32, #tpu.memory_space<vmem>>, vector<18x16x4xf32>
    %43 = vector.shape_cast %42 : vector<18x16x4xf32> to vector<288x4xf32>
    %44 = vector.extract_strided_slice %43 {offsets = [0, 0], sizes = [256, 4], strides = [1, 1]} : vector<288x4xf32> to vector<256x4xf32>
    %c2_45 = arith.constant 2 : index
    %c0_46 = arith.constant 0 : index
    %c0_47 = arith.constant 0 : index
    %45 = vector.load %arg2[%c2_45, %c0_46, %c0_47] : memref<9x4x4xf32, #tpu.memory_space<vmem>>, vector<1x4x4xf32>
    %46 = vector.shape_cast %45 : vector<1x4x4xf32> to vector<4x4xf32>
    %cst_48 = arith.constant dense<0.000000e+00> : vector<256x4xf32>
    %47 = tpu.matmul %44, %46, %cst_48 {dimension_numbers = #tpu.dot_dimension_numbers<[1], [0], [0], [1], [0, 0, 1, 1], [], []>} : vector<256x4xf32>, vector<4x4xf32>, vector<256x4xf32> -> vector<256x4xf32>
    %48 = arith.addf %41, %47 : vector<256x4xf32>
    %49 = vector.extract_strided_slice %43 {offsets = [16, 0], sizes = [256, 4], strides = [1, 1]} : vector<288x4xf32> to vector<256x4xf32>
    %c5 = arith.constant 5 : index
    %c0_49 = arith.constant 0 : index
    %c0_50 = arith.constant 0 : index
    %50 = vector.load %arg2[%c5, %c0_49, %c0_50] : memref<9x4x4xf32, #tpu.memory_space<vmem>>, vector<1x4x4xf32>
    %51 = vector.shape_cast %50 : vector<1x4x4xf32> to vector<4x4xf32>
    %cst_51 = arith.constant dense<0.000000e+00> : vector<256x4xf32>
    %52 = tpu.matmul %49, %51, %cst_51 {dimension_numbers = #tpu.dot_dimension_numbers<[1], [0], [0], [1], [0, 0, 1, 1], [], []>} : vector<256x4xf32>, vector<4x4xf32>, vector<256x4xf32> -> vector<256x4xf32>
    %53 = arith.addf %48, %52 : vector<256x4xf32>
    %54 = vector.extract_strided_slice %43 {offsets = [32, 0], sizes = [256, 4], strides = [1, 1]} : vector<288x4xf32> to vector<256x4xf32>
    %c8 = arith.constant 8 : index
    %c0_52 = arith.constant 0 : index
    %c0_53 = arith.constant 0 : index
    %55 = vector.load %arg2[%c8, %c0_52, %c0_53] : memref<9x4x4xf32, #tpu.memory_space<vmem>>, vector<1x4x4xf32>
    %56 = vector.shape_cast %55 : vector<1x4x4xf32> to vector<4x4xf32>
    %cst_54 = arith.constant dense<0.000000e+00> : vector<256x4xf32>
    %57 = tpu.matmul %54, %56, %cst_54 {dimension_numbers = #tpu.dot_dimension_numbers<[1], [0], [0], [1], [0, 0, 1, 1], [], []>} : vector<256x4xf32>, vector<4x4xf32>, vector<256x4xf32> -> vector<256x4xf32>
    %58 = arith.addf %53, %57 : vector<256x4xf32>
    %c0_55 = arith.constant 0 : index
    %c0_56 = arith.constant 0 : index
    %c0_57 = arith.constant 0 : index
    %59 = vector.load %arg3[%c0_55, %c0_56, %c0_57] : memref<1x1x4xf32, #tpu.memory_space<vmem>>, vector<1x1x4xf32>
    %60 = vector.shape_cast %59 : vector<1x1x4xf32> to vector<1x4xf32>
    %61 = vector.broadcast %60 : vector<1x4xf32> to vector<256x4xf32>
    %62 = arith.addf %58, %61 : vector<256x4xf32>
    %cst_58 = arith.constant 0.000000e+00 : f32
    %63 = vector.broadcast %cst_58 : f32 to vector<256x4xf32>
    %64 = arith.maximumf %62, %63 : vector<256x4xf32>
    %65 = vector.shape_cast %64 : vector<256x4xf32> to vector<16x16x4xf32>
    %c1_59 = arith.constant 1 : index
    %c1_60 = arith.constant 1 : index
    %c0_61 = arith.constant 0 : index
    %66 = vector.load %arg7[%c1_59, %c1_60, %c0_61] : memref<18x18x4xf32, #tpu.memory_space<vmem>>, vector<16x16x4xf32>
    tpu.vector_store %arg7[%c1_59, %c1_60, %c0_61], %65 {strides = array<i32>} : memref<18x18x4xf32, #tpu.memory_space<vmem>>, vector<16x16x4xf32>,
    %c0_62 = arith.constant 0 : index
    %c0_63 = arith.constant 0 : index
    %c0_64 = arith.constant 0 : index
    %67 = vector.load %arg7[%c0_62, %c0_63, %c0_64] : memref<18x18x4xf32, #tpu.memory_space<vmem>>, vector<18x16x4xf32>
    %68 = vector.shape_cast %67 : vector<18x16x4xf32> to vector<288x4xf32>
    %69 = vector.extract_strided_slice %68 {offsets = [0, 0], sizes = [256, 4], strides = [1, 1]} : vector<288x4xf32> to vector<256x4xf32>
    %c0_65 = arith.constant 0 : index
    %c0_66 = arith.constant 0 : index
    %c0_67 = arith.constant 0 : index
    %70 = vector.load %arg4[%c0_65, %c0_66, %c0_67] : memref<9x4x4xf32, #tpu.memory_space<vmem>>, vector<1x4x4xf32>
    %71 = vector.shape_cast %70 : vector<1x4x4xf32> to vector<4x4xf32>
    %cst_68 = arith.constant dense<0.000000e+00> : vector<256x4xf32>
    %72 = tpu.matmul %69, %71, %cst_68 {dimension_numbers = #tpu.dot_dimension_numbers<[1], [0], [0], [1], [0, 0, 1, 1], [], []>} : vector<256x4xf32>, vector<4x4xf32>, vector<256x4xf32> -> vector<256x4xf32>
    %73 = vector.extract_strided_slice %68 {offsets = [16, 0], sizes = [256, 4], strides = [1, 1]} : vector<288x4xf32> to vector<256x4xf32>
    %c3_69 = arith.constant 3 : index
    %c0_70 = arith.constant 0 : index
    %c0_71 = arith.constant 0 : index
    %74 = vector.load %arg4[%c3_69, %c0_70, %c0_71] : memref<9x4x4xf32, #tpu.memory_space<vmem>>, vector<1x4x4xf32>
    %75 = vector.shape_cast %74 : vector<1x4x4xf32> to vector<4x4xf32>
    %cst_72 = arith.constant dense<0.000000e+00> : vector<256x4xf32>
    %76 = tpu.matmul %73, %75, %cst_72 {dimension_numbers = #tpu.dot_dimension_numbers<[1], [0], [0], [1], [0, 0, 1, 1], [], []>} : vector<256x4xf32>, vector<4x4xf32>, vector<256x4xf32> -> vector<256x4xf32>
    %77 = arith.addf %72, %76 : vector<256x4xf32>
    %78 = vector.extract_strided_slice %68 {offsets = [32, 0], sizes = [256, 4], strides = [1, 1]} : vector<288x4xf32> to vector<256x4xf32>
    %c6_73 = arith.constant 6 : index
    %c0_74 = arith.constant 0 : index
    %c0_75 = arith.constant 0 : index
    %79 = vector.load %arg4[%c6_73, %c0_74, %c0_75] : memref<9x4x4xf32, #tpu.memory_space<vmem>>, vector<1x4x4xf32>
    %80 = vector.shape_cast %79 : vector<1x4x4xf32> to vector<4x4xf32>
    %cst_76 = arith.constant dense<0.000000e+00> : vector<256x4xf32>
    %81 = tpu.matmul %78, %80, %cst_76 {dimension_numbers = #tpu.dot_dimension_numbers<[1], [0], [0], [1], [0, 0, 1, 1], [], []>} : vector<256x4xf32>, vector<4x4xf32>, vector<256x4xf32> -> vector<256x4xf32>
    %82 = arith.addf %77, %81 : vector<256x4xf32>
    %c0_77 = arith.constant 0 : index
    %c1_78 = arith.constant 1 : index
    %c0_79 = arith.constant 0 : index
    %83 = vector.load %arg7[%c0_77, %c1_78, %c0_79] : memref<18x18x4xf32, #tpu.memory_space<vmem>>, vector<18x16x4xf32>
    %84 = vector.shape_cast %83 : vector<18x16x4xf32> to vector<288x4xf32>
    %85 = vector.extract_strided_slice %84 {offsets = [0, 0], sizes = [256, 4], strides = [1, 1]} : vector<288x4xf32> to vector<256x4xf32>
    %c1_80 = arith.constant 1 : index
    %c0_81 = arith.constant 0 : index
    %c0_82 = arith.constant 0 : index
    %86 = vector.load %arg4[%c1_80, %c0_81, %c0_82] : memref<9x4x4xf32, #tpu.memory_space<vmem>>, vector<1x4x4xf32>
    %87 = vector.shape_cast %86 : vector<1x4x4xf32> to vector<4x4xf32>
    %cst_83 = arith.constant dense<0.000000e+00> : vector<256x4xf32>
    %88 = tpu.matmul %85, %87, %cst_83 {dimension_numbers = #tpu.dot_dimension_numbers<[1], [0], [0], [1], [0, 0, 1, 1], [], []>} : vector<256x4xf32>, vector<4x4xf32>, vector<256x4xf32> -> vector<256x4xf32>
    %89 = arith.addf %82, %88 : vector<256x4xf32>
    %90 = vector.extract_strided_slice %84 {offsets = [16, 0], sizes = [256, 4], strides = [1, 1]} : vector<288x4xf32> to vector<256x4xf32>
    %c4_84 = arith.constant 4 : index
    %c0_85 = arith.constant 0 : index
    %c0_86 = arith.constant 0 : index
    %91 = vector.load %arg4[%c4_84, %c0_85, %c0_86] : memref<9x4x4xf32, #tpu.memory_space<vmem>>, vector<1x4x4xf32>
    %92 = vector.shape_cast %91 : vector<1x4x4xf32> to vector<4x4xf32>
    %cst_87 = arith.constant dense<0.000000e+00> : vector<256x4xf32>
    %93 = tpu.matmul %90, %92, %cst_87 {dimension_numbers = #tpu.dot_dimension_numbers<[1], [0], [0], [1], [0, 0, 1, 1], [], []>} : vector<256x4xf32>, vector<4x4xf32>, vector<256x4xf32> -> vector<256x4xf32>
    %94 = arith.addf %89, %93 : vector<256x4xf32>
    %95 = vector.extract_strided_slice %84 {offsets = [32, 0], sizes = [256, 4], strides = [1, 1]} : vector<288x4xf32> to vector<256x4xf32>
    %c7_88 = arith.constant 7 : index
    %c0_89 = arith.constant 0 : index
    %c0_90 = arith.constant 0 : index
    %96 = vector.load %arg4[%c7_88, %c0_89, %c0_90] : memref<9x4x4xf32, #tpu.memory_space<vmem>>, vector<1x4x4xf32>
    %97 = vector.shape_cast %96 : vector<1x4x4xf32> to vector<4x4xf32>
    %cst_91 = arith.constant dense<0.000000e+00> : vector<256x4xf32>
    %98 = tpu.matmul %95, %97, %cst_91 {dimension_numbers = #tpu.dot_dimension_numbers<[1], [0], [0], [1], [0, 0, 1, 1], [], []>} : vector<256x4xf32>, vector<4x4xf32>, vector<256x4xf32> -> vector<256x4xf32>
    %99 = arith.addf %94, %98 : vector<256x4xf32>
    %c0_92 = arith.constant 0 : index
    %c2_93 = arith.constant 2 : index
    %c0_94 = arith.constant 0 : index
    %100 = vector.load %arg7[%c0_92, %c2_93, %c0_94] : memref<18x18x4xf32, #tpu.memory_space<vmem>>, vector<18x16x4xf32>
    %101 = vector.shape_cast %100 : vector<18x16x4xf32> to vector<288x4xf32>
    %102 = vector.extract_strided_slice %101 {offsets = [0, 0], sizes = [256, 4], strides = [1, 1]} : vector<288x4xf32> to vector<256x4xf32>
    %c2_95 = arith.constant 2 : index
    %c0_96 = arith.constant 0 : index
    %c0_97 = arith.constant 0 : index
    %103 = vector.load %arg4[%c2_95, %c0_96, %c0_97] : memref<9x4x4xf32, #tpu.memory_space<vmem>>, vector<1x4x4xf32>
    %104 = vector.shape_cast %103 : vector<1x4x4xf32> to vector<4x4xf32>
    %cst_98 = arith.constant dense<0.000000e+00> : vector<256x4xf32>
    %105 = tpu.matmul %102, %104, %cst_98 {dimension_numbers = #tpu.dot_dimension_numbers<[1], [0], [0], [1], [0, 0, 1, 1], [], []>} : vector<256x4xf32>, vector<4x4xf32>, vector<256x4xf32> -> vector<256x4xf32>
    %106 = arith.addf %99, %105 : vector<256x4xf32>
    %107 = vector.extract_strided_slice %101 {offsets = [16, 0], sizes = [256, 4], strides = [1, 1]} : vector<288x4xf32> to vector<256x4xf32>
    %c5_99 = arith.constant 5 : index
    %c0_100 = arith.constant 0 : index
    %c0_101 = arith.constant 0 : index
    %108 = vector.load %arg4[%c5_99, %c0_100, %c0_101] : memref<9x4x4xf32, #tpu.memory_space<vmem>>, vector<1x4x4xf32>
    %109 = vector.shape_cast %108 : vector<1x4x4xf32> to vector<4x4xf32>
    %cst_102 = arith.constant dense<0.000000e+00> : vector<256x4xf32>
    %110 = tpu.matmul %107, %109, %cst_102 {dimension_numbers = #tpu.dot_dimension_numbers<[1], [0], [0], [1], [0, 0, 1, 1], [], []>} : vector<256x4xf32>, vector<4x4xf32>, vector<256x4xf32> -> vector<256x4xf32>
    %111 = arith.addf %106, %110 : vector<256x4xf32>
    %112 = vector.extract_strided_slice %101 {offsets = [32, 0], sizes = [256, 4], strides = [1, 1]} : vector<288x4xf32> to vector<256x4xf32>
    %c8_103 = arith.constant 8 : index
    %c0_104 = arith.constant 0 : index
    %c0_105 = arith.constant 0 : index
    %113 = vector.load %arg4[%c8_103, %c0_104, %c0_105] : memref<9x4x4xf32, #tpu.memory_space<vmem>>, vector<1x4x4xf32>
    %114 = vector.shape_cast %113 : vector<1x4x4xf32> to vector<4x4xf32>
    %cst_106 = arith.constant dense<0.000000e+00> : vector<256x4xf32>
    %115 = tpu.matmul %112, %114, %cst_106 {dimension_numbers = #tpu.dot_dimension_numbers<[1], [0], [0], [1], [0, 0, 1, 1], [], []>} : vector<256x4xf32>, vector<4x4xf32>, vector<256x4xf32> -> vector<256x4xf32>
    %116 = arith.addf %111, %115 : vector<256x4xf32>
    %117 = vector.shape_cast %116 : vector<256x4xf32> to vector<16x16x4xf32>
    %c0_107 = arith.constant 0 : index
    %c0_108 = arith.constant 0 : index
    %c0_109 = arith.constant 0 : index
    %118 = vector.load %arg5[%c0_107, %c0_108, %c0_109] : memref<1x1x4xf32, #tpu.memory_space<vmem>>, vector<1x1x4xf32>
    %119 = vector.broadcast %118 : vector<1x1x4xf32> to vector<16x16x4xf32>
    %120 = arith.addf %117, %119 : vector<16x16x4xf32>
    %121 = arith.addf %7, %120 : vector<16x16x4xf32>
    %cst_110 = arith.constant 0.000000e+00 : f32
    %122 = vector.broadcast %cst_110 : f32 to vector<16x16x4xf32>
    %123 = arith.maximumf %121, %122 : vector<16x16x4xf32>
    %c0_111 = arith.constant 0 : index
    %c0_112 = arith.constant 0 : index
    %c0_113 = arith.constant 0 : index
    %c0_114 = arith.constant 0 : index
    %124 = vector.load %arg6[%c0_111, %c0_112, %c0_113, %c0_114] : memref<1x16x16x4xf32, #tpu.memory_space<vmem>>, vector<1x16x16x4xf32>
    %125 = vector.shape_cast %124 : vector<1x16x16x4xf32> to vector<16x16x4xf32>
    %126 = vector.shape_cast %123 : vector<16x16x4xf32> to vector<1x16x16x4xf32>
    tpu.vector_store %arg6[%c0_111, %c0_112, %c0_113, %c0_114], %126 {strides = array<i32>} : memref<1x16x16x4xf32, #tpu.memory_space<vmem>>, vector<1x16x16x4xf32>,
    return
  }
  func.func @transform_0(%arg0: i32) -> (i32, i32, i32, i32) {
    %c0_i32 = arith.constant 0 : i32
    %c0_i32_0 = arith.constant 0 : i32
    %c0_i32_1 = arith.constant 0 : i32
    %c0_i32_2 = arith.constant 0 : i32
    return %arg0, %c0_i32, %c0_i32_0, %c0_i32_1 : i32, i32, i32, i32
  }
  func.func @transform_1(%arg0: i32) -> (i32, i32, i32) {
    %c0_i32 = arith.constant 0 : i32
    %c0_i32_0 = arith.constant 0 : i32
    %c0_i32_1 = arith.constant 0 : i32
    %c0_i32_2 = arith.constant 0 : i32
    return %c0_i32, %c0_i32_0, %c0_i32_1 : i32, i32, i32
  }
  func.func @transform_2(%arg0: i32) -> (i32, i32, i32) {
    %c0_i32 = arith.constant 0 : i32
    %c0_i32_0 = arith.constant 0 : i32
    %c0_i32_1 = arith.constant 0 : i32
    %c0_i32_2 = arith.constant 0 : i32
    return %c0_i32, %c0_i32_0, %c0_i32_1 : i32, i32, i32
  }
  func.func @transform_3(%arg0: i32) -> (i32, i32, i32) {
    %c0_i32 = arith.constant 0 : i32
    %c0_i32_0 = arith.constant 0 : i32
    %c0_i32_1 = arith.constant 0 : i32
    %c0_i32_2 = arith.constant 0 : i32
    return %c0_i32, %c0_i32_0, %c0_i32_1 : i32, i32, i32
  }
  func.func @transform_4(%arg0: i32) -> (i32, i32, i32) {
    %c0_i32 = arith.constant 0 : i32
    %c0_i32_0 = arith.constant 0 : i32
    %c0_i32_1 = arith.constant 0 : i32
    %c0_i32_2 = arith.constant 0 : i32
    return %c0_i32, %c0_i32_0, %c0_i32_1 : i32, i32, i32
  }
  func.func @transform_5(%arg0: i32) -> (i32, i32, i32, i32) {
    %c0_i32 = arith.constant 0 : i32
    %c0_i32_0 = arith.constant 0 : i32
    %c0_i32_1 = arith.constant 0 : i32
    %c0_i32_2 = arith.constant 0 : i32
    return %arg0, %c0_i32, %c0_i32_0, %c0_i32_1 : i32, i32, i32, i32
  }
}

</mosaic_0001>

<bundles_post_ra>
// kernel: tpu_custom_call.1
= control target key start
LH: loop header
LB: loop body
LE: loop exit
PB: predicated region body
PF: predicated region fallthrough
CT: control target
= control target key end

     0   :  { %s8759_s18 = smov 0   ;;  %s10805_s0 = inlined_call_operand.vmem [shape: f32[2,16,16,4], index: 0, kind: input, shape index: {}]   ;;  %s10806_s1 = inlined_call_operand.vmem [shape: f32[9,4,4], index: 1, kind: input, shape index: {}]   ;;  %s10807_s2 = inlined_call_operand.vmem [shape: f32[1,1,4], index: 2, kind: input, shape index: {}]   ;;  %s10808_s3 = inlined_call_operand.vmem [shape: f32[9,4,4], index: 3, kind: input, shape index: {}]   ;;  %s10809_s4 = inlined_call_operand.vmem [shape: f32[1,1,4], index: 4, kind: input, shape index: {}]   ;;  %s10810_s5 = inlined_call_operand.vmem [shape: f32[2,16,16,4], index: 5, kind: output, shape index: {}]  }
   0x1 LB: > { %s6080_s19 = sadd.s32 4294967295, %s8726_s18   ;;  %p6084_p0 = scmp.ge.s32.totalorder %s8726_s18, 1  ;;  %s8726_s18 = sphi %s8759_s18, %s15_s18  }
   0x2   : > { %p187_p1 = scmp.lt.s32.totalorder %s8726_s18, 3 }
   0x4   : > { %p188_p2 = pnand %p6084_p0, %p187_p1 }
   0x6   : > { %191 = sbr.rel (%p188_p2) target bundleno = 1573 (0x625), region = 40 }
   0xd   : > { %v6089_v0 = vld [vmem:[%s10806_s1 + $0xc] sm:$0xf]  ;;  %vm471_vm0 = vcmask 1043456   ;;  %p215_p3 = scmp.lt.s32.totalorder %s6080_s19, 1  ;;  %vm225_vm1 = vcmask 31744   ;;  %vm234_vm2 = vcmask 24576  }
   0xe   : > { %7299 = vmatprep.subr.msk.mxu0 %vm471_vm0, %v6089_v0  ;;  %v10811_v1 = vmov 0.0   ;;  %v8782_v2 = vld [vmem:[%s10806_s1] sm:$0xf]  ;;  %v8996_v30 = vld [vmem:[%s10806_s1 + $0x18] sm:$0xf]  ;;  %vm228_vm3 = vcmask 25600  }
   0xf   : > { %226 = vst.msk [vmem:[#allocation2] sm:$0xff] %vm225_vm1, %v10811_v1  ;;  %227 = vst.msk [vmem:[#allocation2 + $0x8] sm:$0xff] %vm225_vm1, %v10811_v1  ;;  %7300 = vmatpush3.msk.msra.mxu0 %vm471_vm0, %v6089_v0  ;;  %s10830_s19 = smov (!%p215_p3, %s6080_s19), 1 }
  0x10   : > { %231 = vst.msk [vmem:[#allocation2 + $0x198] sm:$0xff] %vm225_vm1, %v10811_v1  ;;  %232 = vst.msk [vmem:[#allocation2 + $0x1a0] sm:$0xff] %vm225_vm1, %v10811_v1  ;;  %7349 = vmatprep.subr.msk.mxu0 %vm471_vm0, %v8782_v2  ;;  %s6703_s24 = sshll.u32 %s10830_s19, 8 }
  0x11   : > { %236 = vst.msk [vmem:[#allocation2 + $0x18] sm:$0x1] %vm234_vm2, %v10811_v1  ;;  %237 = vst.msk [vmem:[#allocation2 + $0x30] sm:$0x1] %vm234_vm2, %v10811_v1  ;;  %s8863_s27 = scalar_lea.vmem %s10805_s0, %s6703_s24  ;;  %s10675_s21 = scalar_lea.vmem %s10810_s5, %s6703_s24 }
  0x12   : > { %238 = vst.msk [vmem:[#allocation2 + $0x48] sm:$0x1] %vm234_vm2, %v10811_v1  ;;  %239 = vst.msk [vmem:[#allocation2 + $0x60] sm:$0x1] %vm234_vm2, %v10811_v1  ;;  %v8866_v3 = vld [vmem:[%s8863_s27] sm:$0xff]  ;;  %v8869_v4 = vld [vmem:[%s8863_s27 + $0x8] sm:$0xff] }
  0x13   : > { %240 = vst.msk [vmem:[#allocation2 + $0x78] sm:$0x1] %vm234_vm2, %v10811_v1  ;;  %241 = vst.msk [vmem:[#allocation2 + $0x90] sm:$0x1] %vm234_vm2, %v10811_v1  ;;  %v8872_v5 = vld [vmem:[%s8863_s27 + $0x10] sm:$0xff]  ;;  %v8881_v6 = vld [vmem:[%s8863_s27 + $0x18] sm:$0xff] }
  0x14   : > { %242 = vst.msk [vmem:[#allocation2 + $0xa8] sm:$0x1] %vm234_vm2, %v10811_v1  ;;  %243 = vst.msk [vmem:[#allocation2 + $0xc0] sm:$0x1] %vm234_vm2, %v10811_v1  ;;  %v8884_v7 = vld [vmem:[%s8863_s27 + $0x20] sm:$0xff]  ;;  %v8887_v8 = vld [vmem:[%s8863_s27 + $0x28] sm:$0xff] }
  0x15   : > { %244 = vst.msk [vmem:[#allocation2 + $0xd8] sm:$0x1] %vm234_vm2, %v10811_v1  ;;  %245 = vst.msk [vmem:[#allocation2 + $0xf0] sm:$0x1] %vm234_vm2, %v10811_v1  ;;  %v8896_v9 = vld [vmem:[%s8863_s27 + $0x30] sm:$0xff]  ;;  %v8899_v10 = vld [vmem:[%s8863_s27 + $0x38] sm:$0xff] }
  0x16   : > { %246 = vst.msk [vmem:[#allocation2 + $0x108] sm:$0x1] %vm234_vm2, %v10811_v1  ;;  %247 = vst.msk [vmem:[#allocation2 + $0x120] sm:$0x1] %vm234_vm2, %v10811_v1  ;;  %v8902_v11 = vld [vmem:[%s8863_s27 + $0x40] sm:$0xff]  ;;  %v8911_v12 = vld [vmem:[%s8863_s27 + $0x48] sm:$0xff] }
  0x17   : > { %248 = vst.msk [vmem:[#allocation2 + $0x138] sm:$0x1] %vm234_vm2, %v10811_v1  ;;  %249 = vst.msk [vmem:[#allocation2 + $0x150] sm:$0x1] %vm234_vm2, %v10811_v1  ;;  %v8914_v13 = vld [vmem:[%s8863_s27 + $0x50] sm:$0xff]  ;;  %v8917_v14 = vld [vmem:[%s8863_s27 + $0x58] sm:$0xff] }
  0x18   : > { %250 = vst.msk [vmem:[#allocation2 + $0x168] sm:$0x1] %vm234_vm2, %v10811_v1  ;;  %251 = vst.msk [vmem:[#allocation2 + $0x180] sm:$0x1] %vm234_vm2, %v10811_v1  ;;  %v8926_v15 = vld [vmem:[%s8863_s27 + $0x60] sm:$0xff]  ;;  %v8929_v16 = vld [vmem:[%s8863_s27 + $0x68] sm:$0xff] }
  0x19   : > { %254 = vst.msk [vmem:[#allocation2 + $0x29] sm:$0x1] %vm234_vm2, %v10811_v1  ;;  %255 = vst.msk [vmem:[#allocation2 + $0x41] sm:$0x1] %vm234_vm2, %v10811_v1  ;;  %v8932_v17 = vld [vmem:[%s8863_s27 + $0x70] sm:$0xff]  ;;  %v8941_v18 = vld [vmem:[%s8863_s27 + $0x78] sm:$0xff] }
  0x1a   : > { %256 = vst.msk [vmem:[#allocation2 + $0x59] sm:$0x1] %vm234_vm2, %v10811_v1  ;;  %257 = vst.msk [vmem:[#allocation2 + $0x71] sm:$0x1] %vm234_vm2, %v10811_v1  ;;  %v8944_v19 = vld [vmem:[%s8863_s27 + $0x80] sm:$0xff]  ;;  %v8947_v20 = vld [vmem:[%s8863_s27 + $0x88] sm:$0xff] }
  0x1b   : > { %258 = vst.msk [vmem:[#allocation2 + $0x89] sm:$0x1] %vm234_vm2, %v10811_v1  ;;  %259 = vst.msk [vmem:[#allocation2 + $0xa1] sm:$0x1] %vm234_vm2, %v10811_v1  ;;  %v8956_v21 = vld [vmem:[%s8863_s27 + $0x90] sm:$0xff]  ;;  %v8959_v22 = vld [vmem:[%s8863_s27 + $0x98] sm:$0xff] }
  0x1c   : > { %260 = vst.msk [vmem:[#allocation2 + $0xb9] sm:$0x1] %vm234_vm2, %v10811_v1  ;;  %261 = vst.msk [vmem:[#allocation2 + $0xd1] sm:$0x1] %vm234_vm2, %v10811_v1  ;;  %v8962_v23 = vld [vmem:[%s8863_s27 + $0xa0] sm:$0xff]  ;;  %v8971_v24 = vld [vmem:[%s8863_s27 + $0xa8] sm:$0xff] }
  0x1d   : > { %262 = vst.msk [vmem:[#allocation2 + $0xe9] sm:$0x1] %vm234_vm2, %v10811_v1  ;;  %263 = vst.msk [vmem:[#allocation2 + $0x101] sm:$0x1] %vm234_vm2, %v10811_v1  ;;  %v8974_v25 = vld [vmem:[%s8863_s27 + $0xb0] sm:$0xff]  ;;  %v8977_v26 = vld [vmem:[%s8863_s27 + $0xb8] sm:$0xff] }
  0x1e   : > { %264 = vst.msk [vmem:[#allocation2 + $0x119] sm:$0x1] %vm234_vm2, %v10811_v1  ;;  %265 = vst.msk [vmem:[#allocation2 + $0x131] sm:$0x1] %vm234_vm2, %v10811_v1  ;;  %v9019_v35 = vld [vmem:[%s8863_s27 + $0xc0] sm:$0xff]  ;;  %v9022_v36 = vld [vmem:[%s8863_s27 + $0xc8] sm:$0xff] }
  0x1f   : > { %266 = vst.msk [vmem:[#allocation2 + $0x149] sm:$0x1] %vm234_vm2, %v10811_v1  ;;  %267 = vst.msk [vmem:[#allocation2 + $0x161] sm:$0x1] %vm234_vm2, %v10811_v1  ;;  %v9025_v37 = vld [vmem:[%s8863_s27 + $0xd0] sm:$0xff]  ;;  %v9034_v38 = vld [vmem:[%s8863_s27 + $0xd8] sm:$0xff] }
  0x20   : > { %268 = vst.msk [vmem:[#allocation2 + $0x179] sm:$0x1] %vm234_vm2, %v10811_v1  ;;  %269 = vst.msk [vmem:[#allocation2 + $0x191] sm:$0x1] %vm234_vm2, %v10811_v1  ;;  %v9037_v39 = vld [vmem:[%s8863_s27 + $0xe0] sm:$0xff]  ;;  %v9040_v40 = vld [vmem:[%s8863_s27 + $0xe8] sm:$0xff] }
  0x21   : > { %235 = vst.msk [vmem:[#allocation2] sm:$0x1] %vm234_vm2, %v10811_v1  ;;  %252 = vst.msk [vmem:[#allocation2 + $0x198] sm:$0x1] %vm234_vm2, %v10811_v1  ;;  %v9051_v41 = vld [vmem:[%s8863_s27 + $0xf0] sm:$0xff]  ;;  %v9054_v42 = vld [vmem:[%s8863_s27 + $0xf8] sm:$0xff] }
  0x22   : > { %304 = vst.msk [vmem:[#allocation2 + $0x19] sm:$0xff] %vm225_vm1, %v8866_v3  ;;  %305 = vst.msk [vmem:[#allocation2 + $0x21] sm:$0xff] %vm225_vm1, %v8869_v4 }
  0x23   : > { %306 = vst.msk [vmem:[#allocation2 + $0x31] sm:$0xff] %vm225_vm1, %v8872_v5  ;;  %307 = vst.msk [vmem:[#allocation2 + $0x39] sm:$0xff] %vm225_vm1, %v8881_v6 }
  0x24   : > { %308 = vst.msk [vmem:[#allocation2 + $0x49] sm:$0xff] %vm225_vm1, %v8884_v7  ;;  %309 = vst.msk [vmem:[#allocation2 + $0x51] sm:$0xff] %vm225_vm1, %v8887_v8 }
  0x25   : > { %310 = vst.msk [vmem:[#allocation2 + $0x61] sm:$0xff] %vm225_vm1, %v8896_v9  ;;  %311 = vst.msk [vmem:[#allocation2 + $0x69] sm:$0xff] %vm225_vm1, %v8899_v10 }
  0x26   : > { %312 = vst.msk [vmem:[#allocation2 + $0x79] sm:$0xff] %vm225_vm1, %v8902_v11  ;;  %313 = vst.msk [vmem:[#allocation2 + $0x81] sm:$0xff] %vm225_vm1, %v8911_v12 }
  0x27   : > { %314 = vst.msk [vmem:[#allocation2 + $0x91] sm:$0xff] %vm225_vm1, %v8914_v13  ;;  %315 = vst.msk [vmem:[#allocation2 + $0x99] sm:$0xff] %vm225_vm1, %v8917_v14 }
  0x28   : > { %316 = vst.msk [vmem:[#allocation2 + $0xa9] sm:$0xff] %vm225_vm1, %v8926_v15  ;;  %317 = vst.msk [vmem:[#allocation2 + $0xb1] sm:$0xff] %vm225_vm1, %v8929_v16 }
  0x29   : > { %318 = vst.msk [vmem:[#allocation2 + $0xc1] sm:$0xff] %vm225_vm1, %v8932_v17  ;;  %319 = vst.msk [vmem:[#allocation2 + $0xc9] sm:$0xff] %vm225_vm1, %v8941_v18  ;;  %v8979_v27 = vld [vmem:[#allocation2 + $0x18] sm:$0xff]  ;;  %v8981_v28 = vld [vmem:[#allocation2 + $0x20] sm:$0xff] }
  0x2a   : > { %320 = vst.msk [vmem:[#allocation2 + $0xd9] sm:$0xff] %vm225_vm1, %v8944_v19  ;;  %321 = vst.msk [vmem:[#allocation2 + $0xe1] sm:$0xff] %vm225_vm1, %v8947_v20  ;;  %v8983_v29 = vld [vmem:[#allocation2 + $0x30] sm:$0xff]  ;;  %7301 = vmatprep.mubr.msk.f32.mxu0 %vm225_vm1, %v8979_v27  ;;  %v9004_v31 = vld [vmem:[#allocation2 + $0x38] sm:$0xff] }
  0x2b   : > { %322 = vst.msk [vmem:[#allocation2 + $0xf1] sm:$0xff] %vm225_vm1, %v8956_v21  ;;  %323 = vst.msk [vmem:[#allocation2 + $0xf9] sm:$0xff] %vm225_vm1, %v8959_v22  ;;  %7302 = vmatmul.mubr.msk.f32.vlgmr.msra.gmra.mrb[0].mxu0 %vm225_vm1, %v8981_v28  ;;  %v9006_v32 = vld [vmem:[#allocation2 + $0x48] sm:$0xff]  ;;  %v9014_v33 = vld [vmem:[#allocation2 + $0x50] sm:$0xff] }
  0x2c   : > { %324 = vst.msk [vmem:[#allocation2 + $0x109] sm:$0xff] %vm225_vm1, %v8962_v23  ;;  %325 = vst.msk [vmem:[#allocation2 + $0x111] sm:$0xff] %vm225_vm1, %v8971_v24  ;;  %7350 = vmatpush3.msk.msra.mxu0 %vm471_vm0, %v8782_v2  ;;  %7304 = vmatprep.mubr.msk.f32.mxu0 %vm225_vm1, %v8983_v29  ;;  %v9016_v34 = vld [vmem:[#allocation2 + $0x60] sm:$0xff]  ;;  %v9058_v43 = vld [vmem:[#allocation2 + $0x68] sm:$0xff] }
  0x2d   : > { %326 = vst.msk [vmem:[#allocation2 + $0x121] sm:$0xff] %vm225_vm1, %v8974_v25  ;;  %327 = vst.msk [vmem:[#allocation2 + $0x129] sm:$0xff] %vm225_vm1, %v8977_v26  ;;  %7399 = vmatprep.subr.msk.mxu0 %vm471_vm0, %v8996_v30  ;;  %v9064_v44 = vld [vmem:[#allocation2 + $0x78] sm:$0xff]  ;;  %v9070_v45 = vld [vmem:[#allocation2 + $0x80] sm:$0xff] }
  0x2e   : > { %10818 = vst [vmem:[#allocation3_spill] sm:$0xff] %v9025_v37  ;;  %328 = vst.msk [vmem:[#allocation2 + $0x139] sm:$0xff] %vm225_vm1, %v9019_v35  ;;  %v9072_v46 = vld [vmem:[#allocation2 + $0x90] sm:$0xff]  ;;  %v9078_v47 = vld [vmem:[#allocation2 + $0x98] sm:$0xff] }
  0x2f   : > { %7305 = vmatmul.mubr.msk.f32.gmra.mrb[2].mxu0 %vm225_vm1, %v9004_v31  ;;  %329 = vst.msk [vmem:[#allocation2 + $0x141] sm:$0xff] %vm225_vm1, %v9022_v36  ;;  %330 = vst.msk [vmem:[#allocation2 + $0x151] sm:$0xff] %vm225_vm1, %v9025_v37  ;;  %v9080_v48 = vld [vmem:[#allocation2 + $0xa8] sm:$0xff]  ;;  %v9086_v49 = vld [vmem:[#allocation2 + $0xb0] sm:$0xff] }
  0x30   : > { %7307 = vmatprep.mubr.msk.f32.mxu0 %vm225_vm1, %v9006_v32  ;;  %10819 = vst [vmem:[#allocation4_spill] sm:$0xff] %v9037_v39  ;;  %10820 = vst [vmem:[#allocation5_spill] sm:$0xff] %v9040_v40  ;;  %v9088_v50 = vld [vmem:[#allocation2 + $0xc0] sm:$0xff]  ;;  %v9094_v51 = vld [vmem:[#allocation2 + $0xc8] sm:$0xff] }
  0x31   : > { %331 = vst.msk [vmem:[#allocation2 + $0x159] sm:$0xff] %vm225_vm1, %v9034_v38  ;;  %332 = vst.msk [vmem:[#allocation2 + $0x169] sm:$0xff] %vm225_vm1, %v9037_v39  ;;  %v9096_v52 = vld [vmem:[#allocation2 + $0xd8] sm:$0xff]  ;;  %v9102_v53 = vld [vmem:[#allocation2 + $0xe0] sm:$0xff] }
  0x32   : > { %333 = vst.msk [vmem:[#allocation2 + $0x171] sm:$0xff] %vm225_vm1, %v9040_v40  ;;  %10821 = vst [vmem:[#allocation6_spill] sm:$0xff] %v9051_v41  ;;  %v9104_v54 = vld [vmem:[#allocation2 + $0xf0] sm:$0xff]  ;;  %v9110_v55 = vld [vmem:[#allocation2 + $0xf8] sm:$0xff] }
  0x33   : > { %7308 = vmatmul.mubr.msk.f32.gmra.mrb[4].mxu0 %vm225_vm1, %v9014_v33  ;;  %10822 = vst [vmem:[#allocation7_spill] sm:$0xff] %v9054_v42  ;;  %334 = vst.msk [vmem:[#allocation2 + $0x181] sm:$0xff] %vm225_vm1, %v9051_v41  ;;  %v9112_v56 = vld [vmem:[#allocation2 + $0x108] sm:$0xff]  ;;  %v9118_v57 = vld [vmem:[#allocation2 + $0x110] sm:$0xff]  ;;  %v10823_v41 = vmov 0.0  }
  0x34   : > { %7310 = vmatprep.mubr.msk.f32.mxu0 %vm225_vm1, %v9016_v34  ;;  %335 = vst.msk [vmem:[#allocation2 + $0x189] sm:$0xff] %vm225_vm1, %v9054_v42  ;;  %v9120_v58 = vld [vmem:[#allocation2 + $0x120] sm:$0xff]  ;;  %v9126_v59 = vld [vmem:[#allocation2 + $0x128] sm:$0xff] }
  0x35   : > { %v9128_v60 = vld [vmem:[#allocation2 + $0x138] sm:$0xff]  ;;  %229 = vst.msk [vmem:[#allocation2 + $0x10] sm:$0x3] %vm228_vm3, %v10823_v41  ;;  %233 = vst.msk [vmem:[#allocation2 + $0x1a8] sm:$0x3] %vm228_vm3, %v10823_v41  ;;  %v336_v39 = vld [vmem:[#allocation2] sm:$0xff] }
  0x36   : > { %v9134_v61 = vld [vmem:[#allocation2 + $0x140] sm:$0xff]  ;;  %v9136_v62 = vld [vmem:[#allocation2 + $0x150] sm:$0xff]  ;;  %253 = vst.msk [vmem:[#allocation2 + $0x11] sm:$0x1] %vm234_vm2, %v10823_v41  ;;  %270 = vst.msk [vmem:[#allocation2 + $0x1a9] sm:$0x1] %vm234_vm2, %v10823_v41 }
  0x37   : > { %7311 = vmatmul.mubr.msk.f32.gmra.mrb[6].mxu0 %vm225_vm1, %v9058_v43  ;;  %v337_v40 = vld [vmem:[#allocation2 + $0x8] sm:$0xff]  ;;  %v6190_v37 = vld [vmem:[%s10806_s1 + $0x4] sm:$0xf] }
  0x38   : > { %7313 = vmatprep.mubr.msk.f32.mxu0 %vm225_vm1, %v9064_v44  ;;  %v9142_v63 = vld [vmem:[#allocation2 + $0x158] sm:$0xff]  ;;  %v9144_v0 = vld [vmem:[#allocation2 + $0x168] sm:$0xff] }
  0x39   : > { %v9150_v2 = vld [vmem:[#allocation2 + $0x170] sm:$0xff]  ;;  %v9332_v41 = vld [vmem:[#allocation2 + $0x61] sm:$0xff] }
  0x3a   : > { %v9152_v1 = vld [vmem:[#allocation2 + $0x180] sm:$0xff] }
  0x3b   : > { %7314 = vmatmul.mubr.msk.f32.gmra.mrb[8].mxu0 %vm225_vm1, %v9070_v45  ;;  %v9160_v42 = vld [vmem:[#allocation2 + $0x188] sm:$0xff] }
  0x3c   : > { %7316 = vmatprep.mubr.msk.f32.mxu0 %vm225_vm1, %v9072_v46 }
  0x3f   : > { %7317 = vmatmul.mubr.msk.f32.gmra.mrb[10].mxu0 %vm225_vm1, %v9078_v47 }
  0x40   : > { %7319 = vmatprep.mubr.msk.f32.mxu0 %vm225_vm1, %v9080_v48 }
  0x43   : > { %7320 = vmatmul.mubr.msk.f32.gmra.mrb[12].mxu0 %vm225_vm1, %v9086_v49 }
  0x44   : > { %7322 = vmatprep.mubr.msk.f32.mxu0 %vm225_vm1, %v9088_v50 }
  0x47   : > { %7323 = vmatmul.mubr.msk.f32.gmra.mrb[14].mxu0 %vm225_vm1, %v9094_v51 }
  0x48   : > { %7325 = vmatprep.mubr.msk.f32.mxu0 %vm225_vm1, %v9096_v52 }
  0x4b   : > { %7326 = vmatmul.mubr.msk.f32.gmra.mrb[16].mxu0 %vm225_vm1, %v9102_v53 }
  0x4c   : > { %7328 = vmatprep.mubr.msk.f32.mxu0 %vm225_vm1, %v9104_v54 }
  0x4f   : > { %7329 = vmatmul.mubr.msk.f32.gmra.mrb[18].mxu0 %vm225_vm1, %v9110_v55 }
  0x50   : > { %7331 = vmatprep.mubr.msk.f32.mxu0 %vm225_vm1, %v9112_v56 }
  0x53   : > { %7332 = vmatmul.mubr.msk.f32.gmra.mrb[20].mxu0 %vm225_vm1, %v9118_v57 }
  0x54   : > { %7334 = vmatprep.mubr.msk.f32.mxu0 %vm225_vm1, %v9120_v58 }
  0x57   : > { %7335 = vmatmul.mubr.msk.f32.gmra.mrb[22].mxu0 %vm225_vm1, %v9126_v59 }
  0x58   : > { %7337 = vmatprep.mubr.msk.f32.mxu0 %vm225_vm1, %v9128_v60 }
  0x5b   : > { %7338 = vmatmul.mubr.msk.f32.gmra.mrb[24].mxu0 %vm225_vm1, %v9134_v61 }
  0x5c   : > { %7340 = vmatprep.mubr.msk.f32.mxu0 %vm225_vm1, %v9136_v62 }
  0x5f   : > { %7341 = vmatmul.mubr.msk.f32.gmra.mrb[26].mxu0 %vm225_vm1, %v9142_v63 }
  0x60   : > { %7343 = vmatprep.mubr.msk.f32.mxu0 %vm225_vm1, %v9144_v0 }
  0x63   : > { %7344 = vmatmul.mubr.msk.f32.gmra.mrb[28].mxu0 %vm225_vm1, %v9150_v2 }
  0x64   : > { %7346 = vmatprep.mubr.msk.f32.mxu0 %vm225_vm1, %v9152_v1 }
  0x67   : > { %7347 = vmatmul.mubr.msk.f32.gmra.mrb[30].mxu0 %vm225_vm1, %v9160_v42 }
  0x68   : > { %7351 = vmatprep.mubr.msk.f32.mxu0 %vm225_vm1, %v336_v39  ;;  %v9324_v39 = vld [vmem:[#allocation2 + $0x49] sm:$0xff] }
  0x6b   : > { %7352 = vmatmul.mubr.msk.f32.vlgmr.msra.gmra.mrb[0].mxu0 %vm225_vm1, %v337_v40  ;;  %v9330_v40 = vld [vmem:[#allocation2 + $0x51] sm:$0xff] }
  0x6c   : > { %7400 = vmatpush3.msk.msra.mxu0 %vm471_vm0, %v8996_v30  ;;  %7354 = vmatprep.mubr.msk.f32.mxu0 %vm225_vm1, %v8979_v27  ;;  %v6224_v27 = vld [vmem:[%s10806_s1 + $0x10] sm:$0xf]  ;;  %v1202_v30 = vld [vmem:[#allocation2 + $0x1] sm:$0xff] }
  0x6d   : > { %7449 = vmatprep.subr.msk.mxu0 %vm471_vm0, %v6190_v37 }
  0x6f   : > { %7355 = vmatmul.mubr.msk.f32.gmra.mrb[2].mxu0 %vm225_vm1, %v8981_v28  ;;  %v370_v28 = vld [vmem:[#allocation2 + $0x198] sm:$0xff] }
  0x70   : > { %7357 = vmatprep.mubr.msk.f32.mxu0 %vm225_vm1, %v8983_v29 }
  0x73   : > { %7358 = vmatmul.mubr.msk.f32.gmra.mrb[4].mxu0 %vm225_vm1, %v9004_v31 }
  0x74   : > { %7360 = vmatprep.mubr.msk.f32.mxu0 %vm225_vm1, %v9006_v32 }
  0x77   : > { %7361 = vmatmul.mubr.msk.f32.gmra.mrb[6].mxu0 %vm225_vm1, %v9014_v33 }
  0x78   : > { %7363 = vmatprep.mubr.msk.f32.mxu0 %vm225_vm1, %v9016_v34 }
  0x7b   : > { %7364 = vmatmul.mubr.msk.f32.gmra.mrb[8].mxu0 %vm225_vm1, %v9058_v43 }
  0x7c   : > { %7366 = vmatprep.mubr.msk.f32.mxu0 %vm225_vm1, %v9064_v44 }
  0x7f   : > { %7367 = vmatmul.mubr.msk.f32.gmra.mrb[10].mxu0 %vm225_vm1, %v9070_v45 }
  0x80   : > { %7369 = vmatprep.mubr.msk.f32.mxu0 %vm225_vm1, %v9072_v46 }
  0x83   : > { %7370 = vmatmul.mubr.msk.f32.gmra.mrb[12].mxu0 %vm225_vm1, %v9078_v47 }
  0x84   : > { %7372 = vmatprep.mubr.msk.f32.mxu0 %vm225_vm1, %v9080_v48 }
  0x87   : > { %7373 = vmatmul.mubr.msk.f32.gmra.mrb[14].mxu0 %vm225_vm1, %v9086_v49 }
  0x88   : > { %7375 = vmatprep.mubr.msk.f32.mxu0 %vm225_vm1, %v9088_v50 }
  0x8b   : > { %7376 = vmatmul.mubr.msk.f32.gmra.mrb[16].mxu0 %vm225_vm1, %v9094_v51 }
  0x8c   : > { %7378 = vmatprep.mubr.msk.f32.mxu0 %vm225_vm1, %v9096_v52 }
  0x8f   : > { %7379 = vmatmul.mubr.msk.f32.gmra.mrb[18].mxu0 %vm225_vm1, %v9102_v53 }
  0x90   : > { %7381 = vmatprep.mubr.msk.f32.mxu0 %vm225_vm1, %v9104_v54 }
  0x93   : > { %7382 = vmatmul.mubr.msk.f32.gmra.mrb[20].mxu0 %vm225_vm1, %v9110_v55 }
  0x94   : > { %7384 = vmatprep.mubr.msk.f32.mxu0 %vm225_vm1, %v9112_v56 }
  0x97   : > { %7385 = vmatmul.mubr.msk.f32.gmra.mrb[22].mxu0 %vm225_vm1, %v9118_v57 }
  0x98   : > { %7387 = vmatprep.mubr.msk.f32.mxu0 %vm225_vm1, %v9120_v58 }
  0x9b   : > { %7388 = vmatmul.mubr.msk.f32.gmra.mrb[24].mxu0 %vm225_vm1, %v9126_v59 }
  0x9c   : > { %7390 = vmatprep.mubr.msk.f32.mxu0 %vm225_vm1, %v9128_v60 }
  0x9f   : > { %7391 = vmatmul.mubr.msk.f32.gmra.mrb[26].mxu0 %vm225_vm1, %v9134_v61 }
  0xa0   : > { %7393 = vmatprep.mubr.msk.f32.mxu0 %vm225_vm1, %v9136_v62 }
  0xa3   : > { %7394 = vmatmul.mubr.msk.f32.gmra.mrb[28].mxu0 %vm225_vm1, %v9142_v63 }
  0xa4   : > { %7396 = vmatprep.mubr.msk.f32.mxu0 %vm225_vm1, %v9144_v0 }
  0xa7   : > { %7397 = vmatmul.mubr.msk.f32.gmra.mrb[30].mxu0 %vm225_vm1, %v9150_v2 }
  0xa8   : > { %7401 = vmatprep.mubr.msk.f32.mxu0 %vm225_vm1, %v8983_v29  ;;  %v371_v29 = vld [vmem:[#allocation2 + $0x1a0] sm:$0xff] }
  0xab   : > { %7402 = vmatmul.mubr.msk.f32.vlgmr.msra.gmra.mrb[0].mxu0 %vm225_vm1, %v9004_v31  ;;  %v1203_v31 = vld [vmem:[#allocation2 + $0x9] sm:$0xff] }
  0xac   : > { %7450 = vmatpush3.msk.msra.mxu0 %vm471_vm0, %v6190_v37  ;;  %7404 = vmatprep.mubr.msk.f32.mxu0 %vm225_vm1, %v9006_v32  ;;  %v9304_v32 = vld [vmem:[#allocation2 + $0x19] sm:$0xff] }
  0xad   : > { %7499 = vmatprep.subr.msk.mxu0 %vm471_vm0, %v6224_v27  ;;  %v9322_v37 = vld [vmem:[#allocation2 + $0x39] sm:$0xff] }
  0xaf   : > { %7405 = vmatmul.mubr.msk.f32.gmra.mrb[2].mxu0 %vm225_vm1, %v9014_v33  ;;  %v9309_v33 = vld [vmem:[%s10806_s1 + $0x1c] sm:$0xf] }
  0xb0   : > { %7407 = vmatprep.mubr.msk.f32.mxu0 %vm225_vm1, %v9016_v34  ;;  %v9315_v34 = vld [vmem:[#allocation2 + $0x31] sm:$0xff] }
  0xb3   : > { %7408 = vmatmul.mubr.msk.f32.gmra.mrb[4].mxu0 %vm225_vm1, %v9058_v43  ;;  %v9340_v43 = vld [vmem:[#allocation2 + $0x79] sm:$0xff] }
  0xb4   : > { %7410 = vmatprep.mubr.msk.f32.mxu0 %vm225_vm1, %v9064_v44  ;;  %v9346_v44 = vld [vmem:[#allocation2 + $0x81] sm:$0xff] }
  0xb7   : > { %7411 = vmatmul.mubr.msk.f32.gmra.mrb[6].mxu0 %vm225_vm1, %v9070_v45  ;;  %v9348_v45 = vld [vmem:[#allocation2 + $0x91] sm:$0xff] }
  0xb8   : > { %7413 = vmatprep.mubr.msk.f32.mxu0 %vm225_vm1, %v9072_v46  ;;  %v9354_v46 = vld [vmem:[#allocation2 + $0x99] sm:$0xff] }
  0xbb   : > { %7414 = vmatmul.mubr.msk.f32.gmra.mrb[8].mxu0 %vm225_vm1, %v9078_v47  ;;  %v9356_v47 = vld [vmem:[#allocation2 + $0xa9] sm:$0xff] }
  0xbc   : > { %7416 = vmatprep.mubr.msk.f32.mxu0 %vm225_vm1, %v9080_v48  ;;  %v9362_v48 = vld [vmem:[#allocation2 + $0xb1] sm:$0xff] }
  0xbf   : > { %7417 = vmatmul.mubr.msk.f32.gmra.mrb[10].mxu0 %vm225_vm1, %v9086_v49  ;;  %v9364_v49 = vld [vmem:[#allocation2 + $0xc1] sm:$0xff] }
  0xc0   : > { %7419 = vmatprep.mubr.msk.f32.mxu0 %vm225_vm1, %v9088_v50  ;;  %v9370_v50 = vld [vmem:[#allocation2 + $0xc9] sm:$0xff] }
  0xc3   : > { %7420 = vmatmul.mubr.msk.f32.gmra.mrb[12].mxu0 %vm225_vm1, %v9094_v51  ;;  %v9372_v51 = vld [vmem:[#allocation2 + $0xd9] sm:$0xff] }
  0xc4   : > { %7422 = vmatprep.mubr.msk.f32.mxu0 %vm225_vm1, %v9096_v52  ;;  %v9378_v52 = vld [vmem:[#allocation2 + $0xe1] sm:$0xff] }
  0xc7   : > { %7423 = vmatmul.mubr.msk.f32.gmra.mrb[14].mxu0 %vm225_vm1, %v9102_v53  ;;  %v9380_v53 = vld [vmem:[#allocation2 + $0xf1] sm:$0xff] }
  0xc8   : > { %7425 = vmatprep.mubr.msk.f32.mxu0 %vm225_vm1, %v9104_v54  ;;  %v9386_v54 = vld [vmem:[#allocation2 + $0xf9] sm:$0xff] }
  0xcb   : > { %7426 = vmatmul.mubr.msk.f32.gmra.mrb[16].mxu0 %vm225_vm1, %v9110_v55  ;;  %v9388_v55 = vld [vmem:[#allocation2 + $0x109] sm:$0xff] }
  0xcc   : > { %7428 = vmatprep.mubr.msk.f32.mxu0 %vm225_vm1, %v9112_v56  ;;  %v9394_v56 = vld [vmem:[#allocation2 + $0x111] sm:$0xff] }
  0xcf   : > { %7429 = vmatmul.mubr.msk.f32.gmra.mrb[18].mxu0 %vm225_vm1, %v9118_v57  ;;  %v9396_v57 = vld [vmem:[#allocation2 + $0x121] sm:$0xff] }
  0xd0   : > { %7431 = vmatprep.mubr.msk.f32.mxu0 %vm225_vm1, %v9120_v58  ;;  %v9402_v58 = vld [vmem:[#allocation2 + $0x129] sm:$0xff] }
  0xd3   : > { %7432 = vmatmul.mubr.msk.f32.gmra.mrb[20].mxu0 %vm225_vm1, %v9126_v59  ;;  %v9404_v59 = vld [vmem:[#allocation2 + $0x139] sm:$0xff] }
  0xd4   : > { %7434 = vmatprep.mubr.msk.f32.mxu0 %vm225_vm1, %v9128_v60  ;;  %v9410_v60 = vld [vmem:[#allocation2 + $0x141] sm:$0xff] }
  0xd7   : > { %7435 = vmatmul.mubr.msk.f32.gmra.mrb[22].mxu0 %vm225_vm1, %v9134_v61  ;;  %v9412_v61 = vld [vmem:[#allocation2 + $0x151] sm:$0xff] }
  0xd8   : > { %7437 = vmatprep.mubr.msk.f32.mxu0 %vm225_vm1, %v9136_v62  ;;  %v9418_v62 = vld [vmem:[#allocation2 + $0x159] sm:$0xff] }
  0xdb   : > { %7438 = vmatmul.mubr.msk.f32.gmra.mrb[24].mxu0 %vm225_vm1, %v9142_v63  ;;  %v9420_v63 = vld [vmem:[#allocation2 + $0x169] sm:$0xff] }
  0xdc   : > { %7440 = vmatprep.mubr.msk.f32.mxu0 %vm225_vm1, %v9144_v0  ;;  %v9426_v0 = vld [vmem:[#allocation2 + $0x171] sm:$0xff] }
  0xdf   : > { %7441 = vmatmul.mubr.msk.f32.gmra.mrb[26].mxu0 %vm225_vm1, %v9150_v2  ;;  %v6292_v2 = vld [vmem:[%s10806_s1 + $0x8] sm:$0xf] }
  0xe0   : > { %7443 = vmatprep.mubr.msk.f32.mxu0 %vm225_vm1, %v9152_v1  ;;  %v1205_v1 = vld [vmem:[#allocation2 + $0x21] sm:$0xff] }
  0xe3   : > { %7444 = vmatmul.mubr.msk.f32.gmra.mrb[28].mxu0 %vm225_vm1, %v9160_v42  ;;  %v9338_v42 = vld [vmem:[#allocation2 + $0x69] sm:$0xff] }
  0xe4   : > { %7446 = vmatprep.mubr.msk.f32.mxu0 %vm225_vm1, %v370_v28  ;;  %v1235_v28 = vld [vmem:[#allocation2 + $0x189] sm:$0xff] }
  0xe7   : > { %7447 = vmatmul.mubr.msk.f32.gmra.mrb[30].mxu0 %vm225_vm1, %v371_v29  ;;  %v6326_v29 = vld [vmem:[%s10806_s1 + $0x14] sm:$0xf] }
  0xe8   : > { %7451 = vmatprep.mubr.msk.f32.mxu0 %vm225_vm1, %v1202_v30  ;;  %v1236_v30 = vld [vmem:[#allocation2 + $0x199] sm:$0xff] }
  0xeb   : > { %7452 = vmatmul.mubr.msk.f32.vlgmr.msra.gmra.mrb[0].mxu0 %vm225_vm1, %v1203_v31  ;;  %v1237_v31 = vld [vmem:[#allocation2 + $0x1a1] sm:$0xff] }
  0xec   : > { %7500 = vmatpush3.msk.msra.mxu0 %vm471_vm0, %v6224_v27  ;;  %7454 = vmatprep.mubr.msk.f32.mxu0 %vm225_vm1, %v9304_v32  ;;  %v1234_v27 = vld [vmem:[#allocation2 + $0x181] sm:$0xff] }
  0xed   : > { %7549 = vmatprep.subr.msk.mxu0 %vm471_vm0, %v9309_v33 }
  0xef   : > { %7455 = vmatmul.mubr.msk.f32.gmra.mrb[2].mxu0 %vm225_vm1, %v1205_v1 }
  0xf0   : > { %7457 = vmatprep.mubr.msk.f32.mxu0 %vm225_vm1, %v9315_v34 }
  0xf3   : > { %7458 = vmatmul.mubr.msk.f32.gmra.mrb[4].mxu0 %vm225_vm1, %v9322_v37 }
  0xf4   : > { %7460 = vmatprep.mubr.msk.f32.mxu0 %vm225_vm1, %v9324_v39 }
  0xf7   : > { %7461 = vmatmul.mubr.msk.f32.gmra.mrb[6].mxu0 %vm225_vm1, %v9330_v40 }
  0xf8   : > { %7463 = vmatprep.mubr.msk.f32.mxu0 %vm225_vm1, %v9332_v41 }
  0xfb   : > { %7464 = vmatmul.mubr.msk.f32.gmra.mrb[8].mxu0 %vm225_vm1, %v9338_v42 }
  0xfc   : > { %7466 = vmatprep.mubr.msk.f32.mxu0 %vm225_vm1, %v9340_v43 }
  0xff   : > { %7467 = vmatmul.mubr.msk.f32.gmra.mrb[10].mxu0 %vm225_vm1, %v9346_v44 }
 0x100   : > { %7469 = vmatprep.mubr.msk.f32.mxu0 %vm225_vm1, %v9348_v45 }
 0x103   : > { %7470 = vmatmul.mubr.msk.f32.gmra.mrb[12].mxu0 %vm225_vm1, %v9354_v46 }
 0x104   : > { %7472 = vmatprep.mubr.msk.f32.mxu0 %vm225_vm1, %v9356_v47 }
 0x107   : > { %7473 = vmatmul.mubr.msk.f32.gmra.mrb[14].mxu0 %vm225_vm1, %v9362_v48 }
 0x108   : > { %7475 = vmatprep.mubr.msk.f32.mxu0 %vm225_vm1, %v9364_v49 }
 0x10b   : > { %7476 = vmatmul.mubr.msk.f32.gmra.mrb[16].mxu0 %vm225_vm1, %v9370_v50 }
 0x10c   : > { %7478 = vmatprep.mubr.msk.f32.mxu0 %vm225_vm1, %v9372_v51 }
 0x10f   : > { %7479 = vmatmul.mubr.msk.f32.gmra.mrb[18].mxu0 %vm225_vm1, %v9378_v52 }
 0x110   : > { %7481 = vmatprep.mubr.msk.f32.mxu0 %vm225_vm1, %v9380_v53 }
 0x113   : > { %7482 = vmatmul.mubr.msk.f32.gmra.mrb[20].mxu0 %vm225_vm1, %v9386_v54 }
 0x114   : > { %7484 = vmatprep.mubr.msk.f32.mxu0 %vm225_vm1, %v9388_v55 }
 0x117   : > { %7485 = vmatmul.mubr.msk.f32.gmra.mrb[22].mxu0 %vm225_vm1, %v9394_v56 }
 0x118   : > { %7487 = vmatprep.mubr.msk.f32.mxu0 %vm225_vm1, %v9396_v57 }
 0x11b   : > { %7488 = vmatmul.mubr.msk.f32.gmra.mrb[24].mxu0 %vm225_vm1, %v9402_v58 }
 0x11c   : > { %7490 = vmatprep.mubr.msk.f32.mxu0 %vm225_vm1, %v9404_v59 }
 0x11f   : > { %7491 = vmatmul.mubr.msk.f32.gmra.mrb[26].mxu0 %vm225_vm1, %v9410_v60 }
 0x120   : > { %7493 = vmatprep.mubr.msk.f32.mxu0 %vm225_vm1, %v9412_v61 }
 0x123   : > { %7494 = vmatmul.mubr.msk.f32.gmra.mrb[28].mxu0 %vm225_vm1, %v9418_v62 }
 0x124   : > { %7496 = vmatprep.mubr.msk.f32.mxu0 %vm225_vm1, %v9420_v63 }
 0x127   : > { %7497 = vmatmul.mubr.msk.f32.gmra.mrb[30].mxu0 %vm225_vm1, %v9426_v0 }
 0x128   : > { %7501 = vmatprep.mubr.msk.f32.mxu0 %vm225_vm1, %v9304_v32  ;;  %v2132_v32 = vld [vmem:[#allocation2 + $0x2] sm:$0xff] }
 0x12b   : > { %7502 = vmatmul.mubr.msk.f32.vlgmr.msra.gmra.mrb[0].mxu0 %vm225_vm1, %v1205_v1  ;;  %v9563_v1 = vld [vmem:[#allocation2 + $0x1a] sm:$0xff] }
 0x12c   : > { %7550 = vmatpush3.msk.msra.mxu0 %vm471_vm0, %v9309_v33  ;;  %7504 = vmatprep.mubr.msk.f32.mxu0 %vm225_vm1, %v9315_v34  ;;  %v2133_v33 = vld [vmem:[#allocation2 + $0xa] sm:$0xff] }
 0x12d   : > { %7599 = vmatprep.subr.msk.mxu0 %vm471_vm0, %v6292_v2 }
 0x12f   : > { %7505 = vmatmul.mubr.msk.f32.gmra.mrb[2].mxu0 %vm225_vm1, %v9322_v37 }
 0x130   : > { %7507 = vmatprep.mubr.msk.f32.mxu0 %vm225_vm1, %v9324_v39 }
 0x133   : > { %7508 = vmatmul.mubr.msk.f32.gmra.mrb[4].mxu0 %vm225_vm1, %v9330_v40 }
 0x134   : > { %7510 = vmatprep.mubr.msk.f32.mxu0 %vm225_vm1, %v9332_v41 }
 0x137   : > { %7511 = vmatmul.mubr.msk.f32.gmra.mrb[6].mxu0 %vm225_vm1, %v9338_v42 }
 0x138   : > { %7513 = vmatprep.mubr.msk.f32.mxu0 %vm225_vm1, %v9340_v43 }
 0x13b   : > { %7514 = vmatmul.mubr.msk.f32.gmra.mrb[8].mxu0 %vm225_vm1, %v9346_v44 }
 0x13c   : > { %7516 = vmatprep.mubr.msk.f32.mxu0 %vm225_vm1, %v9348_v45 }
 0x13f   : > { %7517 = vmatmul.mubr.msk.f32.gmra.mrb[10].mxu0 %vm225_vm1, %v9354_v46 }
 0x140   : > { %7519 = vmatprep.mubr.msk.f32.mxu0 %vm225_vm1, %v9356_v47 }
 0x143   : > { %7520 = vmatmul.mubr.msk.f32.gmra.mrb[12].mxu0 %vm225_vm1, %v9362_v48 }
 0x144   : > { %7522 = vmatprep.mubr.msk.f32.mxu0 %vm225_vm1, %v9364_v49 }
 0x147   : > { %7523 = vmatmul.mubr.msk.f32.gmra.mrb[14].mxu0 %vm225_vm1, %v9370_v50 }
 0x148   : > { %7525 = vmatprep.mubr.msk.f32.mxu0 %vm225_vm1, %v9372_v51 }
 0x14b   : > { %7526 = vmatmul.mubr.msk.f32.gmra.mrb[16].mxu0 %vm225_vm1, %v9378_v52 }
 0x14c   : > { %7528 = vmatprep.mubr.msk.f32.mxu0 %vm225_vm1, %v9380_v53 }
 0x14f   : > { %7529 = vmatmul.mubr.msk.f32.gmra.mrb[18].mxu0 %vm225_vm1, %v9386_v54 }
 0x150   : > { %7531 = vmatprep.mubr.msk.f32.mxu0 %vm225_vm1, %v9388_v55 }
 0x153   : > { %7532 = vmatmul.mubr.msk.f32.gmra.mrb[20].mxu0 %vm225_vm1, %v9394_v56 }
 0x154   : > { %7534 = vmatprep.mubr.msk.f32.mxu0 %vm225_vm1, %v9396_v57 }
 0x157   : > { %7535 = vmatmul.mubr.msk.f32.gmra.mrb[22].mxu0 %vm225_vm1, %v9402_v58 }
 0x158   : > { %7537 = vmatprep.mubr.msk.f32.mxu0 %vm225_vm1, %v9404_v59 }
 0x15b   : > { %7538 = vmatmul.mubr.msk.f32.gmra.mrb[24].mxu0 %vm225_vm1, %v9410_v60 }
 0x15c   : > { %7540 = vmatprep.mubr.msk.f32.mxu0 %vm225_vm1, %v9412_v61 }
 0x15f   : > { %7541 = vmatmul.mubr.msk.f32.gmra.mrb[26].mxu0 %vm225_vm1, %v9418_v62 }
 0x160   : > { %7543 = vmatprep.mubr.msk.f32.mxu0 %vm225_vm1, %v9420_v63 }
 0x163   : > { %7544 = vmatmul.mubr.msk.f32.gmra.mrb[28].mxu0 %vm225_vm1, %v9426_v0 }
 0x164   : > { %7546 = vmatprep.mubr.msk.f32.mxu0 %vm225_vm1, %v1234_v27 }
 0x167   : > { %7547 = vmatmul.mubr.msk.f32.gmra.mrb[30].mxu0 %vm225_vm1, %v1235_v28 }
 0x168   : > { %7551 = vmatprep.mubr.msk.f32.mxu0 %vm225_vm1, %v9315_v34  ;;  %v9568_v34 = vld [vmem:[%s10806_s1 + $0x20] sm:$0xf] }
 0x16b   : > { %7552 = vmatmul.mubr.msk.f32.vlgmr.msra.gmra.mrb[0].mxu0 %vm225_vm1, %v9322_v37  ;;  %v2135_v37 = vld [vmem:[#allocation2 + $0x22] sm:$0xff] }
 0x16c   : > { %7600 = vmatpush3.msk.msra.mxu0 %vm471_vm0, %v6292_v2  ;;  %7554 = vmatprep.mubr.msk.f32.mxu0 %vm225_vm1, %v9324_v39  ;;  %v9574_v39 = vld [vmem:[#allocation2 + $0x32] sm:$0xff]  ;;  %v9679_v2 = vld [vmem:[#allocation2 + $0x16a] sm:$0xff] }
 0x16d   : > { %7649 = vmatprep.subr.msk.mxu0 %vm471_vm0, %v6326_v29 }
 0x16f   : > { %7555 = vmatmul.mubr.msk.f32.gmra.mrb[2].mxu0 %vm225_vm1, %v9330_v40  ;;  %v9581_v40 = vld [vmem:[#allocation2 + $0x3a] sm:$0xff] }
 0x170   : > { %7557 = vmatprep.mubr.msk.f32.mxu0 %vm225_vm1, %v9332_v41  ;;  %v9583_v41 = vld [vmem:[#allocation2 + $0x4a] sm:$0xff] }
 0x173   : > { %7558 = vmatmul.mubr.msk.f32.gmra.mrb[4].mxu0 %vm225_vm1, %v9338_v42  ;;  %v9589_v42 = vld [vmem:[#allocation2 + $0x52] sm:$0xff] }
 0x174   : > { %7560 = vmatprep.mubr.msk.f32.mxu0 %vm225_vm1, %v9340_v43  ;;  %v9591_v43 = vld [vmem:[#allocation2 + $0x62] sm:$0xff] }
 0x177   : > { %7561 = vmatmul.mubr.msk.f32.gmra.mrb[6].mxu0 %vm225_vm1, %v9346_v44  ;;  %v9597_v44 = vld [vmem:[#allocation2 + $0x6a] sm:$0xff] }
 0x178   : > { %7563 = vmatprep.mubr.msk.f32.mxu0 %vm225_vm1, %v9348_v45  ;;  %v9599_v45 = vld [vmem:[#allocation2 + $0x7a] sm:$0xff] }
 0x17b   : > { %7564 = vmatmul.mubr.msk.f32.gmra.mrb[8].mxu0 %vm225_vm1, %v9354_v46  ;;  %v9605_v46 = vld [vmem:[#allocation2 + $0x82] sm:$0xff] }
 0x17c   : > { %7566 = vmatprep.mubr.msk.f32.mxu0 %vm225_vm1, %v9356_v47  ;;  %v9607_v47 = vld [vmem:[#allocation2 + $0x92] sm:$0xff] }
 0x17f   : > { %7567 = vmatmul.mubr.msk.f32.gmra.mrb[10].mxu0 %vm225_vm1, %v9362_v48  ;;  %v9613_v48 = vld [vmem:[#allocation2 + $0x9a] sm:$0xff] }
 0x180   : > { %7569 = vmatprep.mubr.msk.f32.mxu0 %vm225_vm1, %v9364_v49  ;;  %v9615_v49 = vld [vmem:[#allocation2 + $0xaa] sm:$0xff] }
 0x183   : > { %7570 = vmatmul.mubr.msk.f32.gmra.mrb[12].mxu0 %vm225_vm1, %v9370_v50  ;;  %v9621_v50 = vld [vmem:[#allocation2 + $0xb2] sm:$0xff] }
 0x184   : > { %7572 = vmatprep.mubr.msk.f32.mxu0 %vm225_vm1, %v9372_v51  ;;  %v9623_v51 = vld [vmem:[#allocation2 + $0xc2] sm:$0xff] }
 0x187   : > { %7573 = vmatmul.mubr.msk.f32.gmra.mrb[14].mxu0 %vm225_vm1, %v9378_v52  ;;  %v9629_v52 = vld [vmem:[#allocation2 + $0xca] sm:$0xff] }
 0x188   : > { %7575 = vmatprep.mubr.msk.f32.mxu0 %vm225_vm1, %v9380_v53  ;;  %v9631_v53 = vld [vmem:[#allocation2 + $0xda] sm:$0xff] }
 0x18b   : > { %7576 = vmatmul.mubr.msk.f32.gmra.mrb[16].mxu0 %vm225_vm1, %v9386_v54  ;;  %v9637_v54 = vld [vmem:[#allocation2 + $0xe2] sm:$0xff] }
 0x18c   : > { %7578 = vmatprep.mubr.msk.f32.mxu0 %vm225_vm1, %v9388_v55  ;;  %v9639_v55 = vld [vmem:[#allocation2 + $0xf2] sm:$0xff] }
 0x18f   : > { %7579 = vmatmul.mubr.msk.f32.gmra.mrb[18].mxu0 %vm225_vm1, %v9394_v56  ;;  %v9645_v56 = vld [vmem:[#allocation2 + $0xfa] sm:$0xff] }
 0x190   : > { %7581 = vmatprep.mubr.msk.f32.mxu0 %vm225_vm1, %v9396_v57  ;;  %v9647_v57 = vld [vmem:[#allocation2 + $0x10a] sm:$0xff] }
 0x193   : > { %7582 = vmatmul.mubr.msk.f32.gmra.mrb[20].mxu0 %vm225_vm1, %v9402_v58  ;;  %v9653_v58 = vld [vmem:[#allocation2 + $0x112] sm:$0xff] }
 0x194   : > { %7584 = vmatprep.mubr.msk.f32.mxu0 %vm225_vm1, %v9404_v59  ;;  %v9655_v59 = vld [vmem:[#allocation2 + $0x122] sm:$0xff] }
 0x197   : > { %7585 = vmatmul.mubr.msk.f32.gmra.mrb[22].mxu0 %vm225_vm1, %v9410_v60  ;;  %v9661_v60 = vld [vmem:[#allocation2 + $0x12a] sm:$0xff] }
 0x198   : > { %7587 = vmatprep.mubr.msk.f32.mxu0 %vm225_vm1, %v9412_v61  ;;  %v9663_v61 = vld [vmem:[#allocation2 + $0x13a] sm:$0xff] }
 0x19b   : > { %7588 = vmatmul.mubr.msk.f32.gmra.mrb[24].mxu0 %vm225_vm1, %v9418_v62  ;;  %v9669_v62 = vld [vmem:[#allocation2 + $0x142] sm:$0xff] }
 0x19c   : > { %7590 = vmatprep.mubr.msk.f32.mxu0 %vm225_vm1, %v9420_v63  ;;  %v9671_v63 = vld [vmem:[#allocation2 + $0x152] sm:$0xff] }
 0x19f   : > { %7591 = vmatmul.mubr.msk.f32.gmra.mrb[26].mxu0 %vm225_vm1, %v9426_v0  ;;  %v9677_v0 = vld [vmem:[#allocation2 + $0x15a] sm:$0xff] }
 0x1a0   : > { %7593 = vmatprep.mubr.msk.f32.mxu0 %vm225_vm1, %v1234_v27  ;;  %v9685_v27 = vld [vmem:[#allocation2 + $0x172] sm:$0xff] }
 0x1a3   : > { %7594 = vmatmul.mubr.msk.f32.gmra.mrb[28].mxu0 %vm225_vm1, %v1235_v28  ;;  %v2164_v28 = vld [vmem:[#allocation2 + $0x182] sm:$0xff] }
 0x1a4   : > { %7596 = vmatprep.mubr.msk.f32.mxu0 %vm225_vm1, %v1236_v30  ;;  %v2166_v30 = vld [vmem:[#allocation2 + $0x19a] sm:$0xff] }
 0x1a7   : > { %7597 = vmatmul.mubr.msk.f32.gmra.mrb[30].mxu0 %vm225_vm1, %v1237_v31  ;;  %v2167_v31 = vld [vmem:[#allocation2 + $0x1a2] sm:$0xff] }
 0x1a8   : > { %7601 = vmatprep.mubr.msk.f32.mxu0 %vm225_vm1, %v2132_v32  ;;  %v6395_v32 = vld [vmem:[%s10808_s3 + $0xc] sm:$0xf] }
 0x1a9   : > { %7749 = vmatprep.subr.msk.mxu1 %vm471_vm0, %v6395_v32 }
 0x1aa   : > { %7750 = vmatpush3.msk.msra.mxu1 %vm471_vm0, %v6395_v32 }
 0x1ab   : > { %7602 = vmatmul.mubr.msk.f32.vlgmr.msra.gmra.mrb[0].mxu0 %vm225_vm1, %v2133_v33  ;;  %v3201_v33 = vld [vmem:[%s10808_s3] sm:$0xf] }
 0x1ac   : > { %7650 = vmatpush3.msk.msra.mxu0 %vm471_vm0, %v6326_v29  ;;  %7604 = vmatprep.mubr.msk.f32.mxu0 %vm225_vm1, %v9563_v1  ;;  %v2165_v29 = vld [vmem:[#allocation2 + $0x18a] sm:$0xff] }
 0x1ad   : > { %7699 = vmatprep.subr.msk.mxu0 %vm471_vm0, %v9568_v34  ;;  %7799 = vmatprep.subr.msk.mxu1 %vm471_vm0, %v3201_v33 }
 0x1af   : > { %7605 = vmatmul.mubr.msk.f32.gmra.mrb[2].mxu0 %vm225_vm1, %v2135_v37 }
 0x1b0   : > { %7607 = vmatprep.mubr.msk.f32.mxu0 %vm225_vm1, %v9574_v39 }
 0x1b3   : > { %7608 = vmatmul.mubr.msk.f32.gmra.mrb[4].mxu0 %vm225_vm1, %v9581_v40 }
 0x1b4   : > { %7610 = vmatprep.mubr.msk.f32.mxu0 %vm225_vm1, %v9583_v41 }
 0x1b7   : > { %7611 = vmatmul.mubr.msk.f32.gmra.mrb[6].mxu0 %vm225_vm1, %v9589_v42 }
 0x1b8   : > { %7613 = vmatprep.mubr.msk.f32.mxu0 %vm225_vm1, %v9591_v43 }
 0x1bb   : > { %7614 = vmatmul.mubr.msk.f32.gmra.mrb[8].mxu0 %vm225_vm1, %v9597_v44 }
 0x1bc   : > { %7616 = vmatprep.mubr.msk.f32.mxu0 %vm225_vm1, %v9599_v45 }
 0x1bf   : > { %7617 = vmatmul.mubr.msk.f32.gmra.mrb[10].mxu0 %vm225_vm1, %v9605_v46 }
 0x1c0   : > { %7619 = vmatprep.mubr.msk.f32.mxu0 %vm225_vm1, %v9607_v47 }
 0x1c3   : > { %7620 = vmatmul.mubr.msk.f32.gmra.mrb[12].mxu0 %vm225_vm1, %v9613_v48 }
 0x1c4   : > { %7622 = vmatprep.mubr.msk.f32.mxu0 %vm225_vm1, %v9615_v49 }
 0x1c7   : > { %7623 = vmatmul.mubr.msk.f32.gmra.mrb[14].mxu0 %vm225_vm1, %v9621_v50 }
 0x1c8   : > { %7625 = vmatprep.mubr.msk.f32.mxu0 %vm225_vm1, %v9623_v51 }
 0x1cb   : > { %7626 = vmatmul.mubr.msk.f32.gmra.mrb[16].mxu0 %vm225_vm1, %v9629_v52 }
 0x1cc   : > { %7628 = vmatprep.mubr.msk.f32.mxu0 %vm225_vm1, %v9631_v53 }
 0x1cf   : > { %7629 = vmatmul.mubr.msk.f32.gmra.mrb[18].mxu0 %vm225_vm1, %v9637_v54 }
 0x1d0   : > { %7631 = vmatprep.mubr.msk.f32.mxu0 %vm225_vm1, %v9639_v55 }
 0x1d3   : > { %7632 = vmatmul.mubr.msk.f32.gmra.mrb[20].mxu0 %vm225_vm1, %v9645_v56 }
 0x1d4   : > { %7634 = vmatprep.mubr.msk.f32.mxu0 %vm225_vm1, %v9647_v57 }
 0x1d7   : > { %7635 = vmatmul.mubr.msk.f32.gmra.mrb[22].mxu0 %vm225_vm1, %v9653_v58 }
 0x1d8   : > { %7637 = vmatprep.mubr.msk.f32.mxu0 %vm225_vm1, %v9655_v59 }
 0x1db   : > { %7638 = vmatmul.mubr.msk.f32.gmra.mrb[24].mxu0 %vm225_vm1, %v9661_v60 }
 0x1dc   : > { %7640 = vmatprep.mubr.msk.f32.mxu0 %vm225_vm1, %v9663_v61 }
 0x1df   : > { %7641 = vmatmul.mubr.msk.f32.gmra.mrb[26].mxu0 %vm225_vm1, %v9669_v62 }
 0x1e0   : > { %7643 = vmatprep.mubr.msk.f32.mxu0 %vm225_vm1, %v9671_v63 }
 0x1e3   : > { %7644 = vmatmul.mubr.msk.f32.gmra.mrb[28].mxu0 %vm225_vm1, %v9677_v0 }
 0x1e4   : > { %7646 = vmatprep.mubr.msk.f32.mxu0 %vm225_vm1, %v9679_v2 }
 0x1e7   : > { %7647 = vmatmul.mubr.msk.f32.gmra.mrb[30].mxu0 %vm225_vm1, %v9685_v27 }
 0x1e8   : > { %7651 = vmatprep.mubr.msk.f32.mxu0 %vm225_vm1, %v9563_v1  ;;  %v9824_v1 = vld [vmem:[%s10807_s2] ss:$0 sm:$0xff] }
 0x1eb   : > { %7652 = vmatmul.mubr.msk.f32.vlgmr.msra.gmra.mrb[0].mxu0 %vm225_vm1, %v2135_v37 }
 0x1ec   : > { %7700 = vmatpush3.msk.msra.mxu0 %vm471_vm0, %v9568_v34  ;;  %7654 = vmatprep.mubr.msk.f32.mxu0 %vm225_vm1, %v9574_v39 }
 0x1ef   : > { %7655 = vmatmul.mubr.msk.f32.gmra.mrb[2].mxu0 %vm225_vm1, %v9581_v40 }
 0x1f0   : > { %7657 = vmatprep.mubr.msk.f32.mxu0 %vm225_vm1, %v9583_v41 }
 0x1f3   : > { %7658 = vmatmul.mubr.msk.f32.gmra.mrb[4].mxu0 %vm225_vm1, %v9589_v42 }
 0x1f4   : > { %7660 = vmatprep.mubr.msk.f32.mxu0 %vm225_vm1, %v9591_v43 }
 0x1f7   : > { %7661 = vmatmul.mubr.msk.f32.gmra.mrb[6].mxu0 %vm225_vm1, %v9597_v44 }
 0x1f8   : > { %7663 = vmatprep.mubr.msk.f32.mxu0 %vm225_vm1, %v9599_v45 }
 0x1fb   : > { %7664 = vmatmul.mubr.msk.f32.gmra.mrb[8].mxu0 %vm225_vm1, %v9605_v46 }
 0x1fc   : > { %7666 = vmatprep.mubr.msk.f32.mxu0 %vm225_vm1, %v9607_v47 }
 0x1ff   : > { %7667 = vmatmul.mubr.msk.f32.gmra.mrb[10].mxu0 %vm225_vm1, %v9613_v48 }
 0x200   : > { %7669 = vmatprep.mubr.msk.f32.mxu0 %vm225_vm1, %v9615_v49 }
 0x203   : > { %7670 = vmatmul.mubr.msk.f32.gmra.mrb[12].mxu0 %vm225_vm1, %v9621_v50 }
 0x204   : > { %7672 = vmatprep.mubr.msk.f32.mxu0 %vm225_vm1, %v9623_v51 }
 0x207   : > { %7673 = vmatmul.mubr.msk.f32.gmra.mrb[14].mxu0 %vm225_vm1, %v9629_v52 }
 0x208   : > { %7675 = vmatprep.mubr.msk.f32.mxu0 %vm225_vm1, %v9631_v53 }
 0x20b   : > { %7676 = vmatmul.mubr.msk.f32.gmra.mrb[16].mxu0 %vm225_vm1, %v9637_v54 }
 0x20c   : > { %7678 = vmatprep.mubr.msk.f32.mxu0 %vm225_vm1, %v9639_v55 }
 0x20f   : > { %7679 = vmatmul.mubr.msk.f32.gmra.mrb[18].mxu0 %vm225_vm1, %v9645_v56 }
 0x210   : > { %7681 = vmatprep.mubr.msk.f32.mxu0 %vm225_vm1, %v9647_v57 }
 0x213   : > { %7682 = vmatmul.mubr.msk.f32.gmra.mrb[20].mxu0 %vm225_vm1, %v9653_v58 }
 0x214   : > { %7684 = vmatprep.mubr.msk.f32.mxu0 %vm225_vm1, %v9655_v59 }
 0x217   : > { %7685 = vmatmul.mubr.msk.f32.gmra.mrb[22].mxu0 %vm225_vm1, %v9661_v60 }
 0x218   : > { %7687 = vmatprep.mubr.msk.f32.mxu0 %vm225_vm1, %v9663_v61 }
 0x21b   : > { %7688 = vmatmul.mubr.msk.f32.gmra.mrb[24].mxu0 %vm225_vm1, %v9669_v62 }
 0x21c   : > { %7690 = vmatprep.mubr.msk.f32.mxu0 %vm225_vm1, %v9671_v63 }
 0x21f   : > { %7691 = vmatmul.mubr.msk.f32.gmra.mrb[26].mxu0 %vm225_vm1, %v9677_v0 }
 0x220   : > { %7693 = vmatprep.mubr.msk.f32.mxu0 %vm225_vm1, %v9679_v2 }
 0x223   : > { %7694 = vmatmul.mubr.msk.f32.gmra.mrb[28].mxu0 %vm225_vm1, %v9685_v27 }
 0x224   : > { %7696 = vmatprep.mubr.msk.f32.mxu0 %vm225_vm1, %v2164_v28 }
 0x227   : > { %7697 = vmatmul.mubr.msk.f32.gmra.mrb[30].mxu0 %vm225_vm1, %v2165_v29 }
 0x228   : > { %7701 = vmatprep.mubr.msk.f32.mxu0 %vm225_vm1, %v9574_v39 }
 0x22b   : > { %7702 = vmatmul.mubr.msk.f32.vlgmr.msra.gmra.mrb[0].mxu0 %vm225_vm1, %v9581_v40 }
 0x22c   : > { %7704 = vmatprep.mubr.msk.f32.mxu0 %vm225_vm1, %v9583_v41 }
 0x22f   : > { %7705 = vmatmul.mubr.msk.f32.gmra.mrb[2].mxu0 %vm225_vm1, %v9589_v42 }
 0x230   : > { %7707 = vmatprep.mubr.msk.f32.mxu0 %vm225_vm1, %v9591_v43 }
 0x233   : > { %7708 = vmatmul.mubr.msk.f32.gmra.mrb[4].mxu0 %vm225_vm1, %v9597_v44 }
 0x234   : > { %7710 = vmatprep.mubr.msk.f32.mxu0 %vm225_vm1, %v9599_v45 }
 0x237   : > { %7711 = vmatmul.mubr.msk.f32.gmra.mrb[6].mxu0 %vm225_vm1, %v9605_v46 }
 0x238   : > { %7713 = vmatprep.mubr.msk.f32.mxu0 %vm225_vm1, %v9607_v47 }
 0x23b   : > { %7714 = vmatmul.mubr.msk.f32.gmra.mrb[8].mxu0 %vm225_vm1, %v9613_v48 }
 0x23c   : > { %7716 = vmatprep.mubr.msk.f32.mxu0 %vm225_vm1, %v9615_v49 }
 0x23f   : > { %7717 = vmatmul.mubr.msk.f32.gmra.mrb[10].mxu0 %vm225_vm1, %v9621_v50 }
 0x240   : > { %7719 = vmatprep.mubr.msk.f32.mxu0 %vm225_vm1, %v9623_v51 }
 0x243   : > { %7720 = vmatmul.mubr.msk.f32.gmra.mrb[12].mxu0 %vm225_vm1, %v9629_v52 }
 0x244   : > { %7722 = vmatprep.mubr.msk.f32.mxu0 %vm225_vm1, %v9631_v53 }
 0x247   : > { %7723 = vmatmul.mubr.msk.f32.gmra.mrb[14].mxu0 %vm225_vm1, %v9637_v54 }
 0x248   : > { %7725 = vmatprep.mubr.msk.f32.mxu0 %vm225_vm1, %v9639_v55 }
 0x24b   : > { %7726 = vmatmul.mubr.msk.f32.gmra.mrb[16].mxu0 %vm225_vm1, %v9645_v56 }
 0x24c   : > { %7728 = vmatprep.mubr.msk.f32.mxu0 %vm225_vm1, %v9647_v57 }
 0x24f   : > { %7729 = vmatmul.mubr.msk.f32.gmra.mrb[18].mxu0 %vm225_vm1, %v9653_v58 }
 0x250   : > { %7731 = vmatprep.mubr.msk.f32.mxu0 %vm225_vm1, %v9655_v59 }
 0x253   : > { %7732 = vmatmul.mubr.msk.f32.gmra.mrb[20].mxu0 %vm225_vm1, %v9661_v60 }
 0x254   : > { %7734 = vmatprep.mubr.msk.f32.mxu0 %vm225_vm1, %v9663_v61  ;;  %v9849_v61 = vld [vmem:[%s10808_s3 + $0x18] sm:$0xf] }
 0x257   : > { %7735 = vmatmul.mubr.msk.f32.gmra.mrb[22].mxu0 %vm225_vm1, %v9669_v62 }
 0x258   : > { %7737 = vmatprep.mubr.msk.f32.mxu0 %vm225_vm1, %v9671_v63 }
 0x25b   : > { %7738 = vmatmul.mubr.msk.f32.gmra.mrb[24].mxu0 %vm225_vm1, %v9677_v0 }
 0x25c   : > { %7740 = vmatprep.mubr.msk.f32.mxu0 %vm225_vm1, %v9679_v2 }
 0x25f   : > { %7741 = vmatmul.mubr.msk.f32.gmra.mrb[26].mxu0 %vm225_vm1, %v9685_v27 }
 0x260   : > { %7743 = vmatprep.mubr.msk.f32.mxu0 %vm225_vm1, %v2164_v28 }
 0x263   : > { %7744 = vmatmul.mubr.msk.f32.gmra.mrb[28].mxu0 %vm225_vm1, %v2165_v29 }
 0x264   : > { %7746 = vmatprep.mubr.msk.f32.mxu0 %vm225_vm1, %v2166_v30 }
 0x267   : > { %7747 = vmatmul.mubr.msk.f32.gmra.mrb[30].mxu0 %vm225_vm1, %v2167_v31 }
 0x2fe   : > { %v7703_v34 = vpop.f32.mrb[0].mxu0 }
 0x2ff   : > { %v3070_v37 = vadd.f32 %v7703_v34, %v9824_v1  ;;  %v2871_v39 = vpop.f32.mrb[1].mxu0 }
 0x300   : > { %v3069_v40 = vadd.f32 %v9824_v1, %v2871_v39 }
 0x301   : > { %v3102_v41 = vmax.f32 %v3070_v37, 0.0 }
 0x302   : > { %v3101_v42 = vmax.f32 %v3069_v40, 0.0  ;;  %v7706_v43 = vpop.f32.mrb[2].mxu0 }
 0x303   : > { %3134 = vst.msk [vmem:[#allocation2 + $0x21] sm:$0xff] %vm225_vm1, %v3102_v41  ;;  %v3072_v44 = vadd.f32 %v7706_v43, %v9824_v1  ;;  %v2881_v45 = vpop.f32.mrb[3].mxu0 }
 0x304   : > { %3133 = vst.msk [vmem:[#allocation2 + $0x19] sm:$0xff] %vm225_vm1, %v3101_v42  ;;  %v3071_v46 = vadd.f32 %v9824_v1, %v2881_v45 }
 0x305   : > { %v3104_v47 = vmax.f32 %v3072_v44, 0.0 }
 0x306   : > { %v3103_v48 = vmax.f32 %v3071_v46, 0.0  ;;  %v7709_v49 = vpop.f32.mrb[4].mxu0 }
 0x307   : > { %3136 = vst.msk [vmem:[#allocation2 + $0x39] sm:$0xff] %vm225_vm1, %v3104_v47  ;;  %v3074_v50 = vadd.f32 %v7709_v49, %v9824_v1  ;;  %v2891_v51 = vpop.f32.mrb[5].mxu0 }
 0x308   : > { %3135 = vst.msk [vmem:[#allocation2 + $0x31] sm:$0xff] %vm225_vm1, %v3103_v48  ;;  %v3073_v52 = vadd.f32 %v9824_v1, %v2891_v51 }
 0x309   : > { %v3106_v53 = vmax.f32 %v3074_v50, 0.0 }
 0x30a   : > { %v3105_v54 = vmax.f32 %v3073_v52, 0.0  ;;  %v7712_v55 = vpop.f32.mrb[6].mxu0 }
 0x30b   : > { %3138 = vst.msk [vmem:[#allocation2 + $0x51] sm:$0xff] %vm225_vm1, %v3106_v53  ;;  %v3076_v56 = vadd.f32 %v7712_v55, %v9824_v1  ;;  %v2901_v57 = vpop.f32.mrb[7].mxu0  ;;  %v9838_v58 = vld [vmem:[#allocation2 + $0x18] sm:$0xff]  ;;  %v9840_v59 = vld [vmem:[#allocation2 + $0x20] sm:$0xff] }
 0x30c   : > { %3137 = vst.msk [vmem:[#allocation2 + $0x49] sm:$0xff] %vm225_vm1, %v3105_v54  ;;  %v3075_v60 = vadd.f32 %v9824_v1, %v2901_v57  ;;  %7751 = vmatprep.mubr.msk.f32.mxu1 %vm225_vm1, %v9838_v58 }
 0x30d   : > { %v3108_v62 = vmax.f32 %v3076_v56, 0.0  ;;  %7752 = vmatmul.mubr.msk.f32.vlgmr.msra.gmra.mrb[0].mxu1 %vm225_vm1, %v9840_v59 }
 0x30e   : > { %v3107_v63 = vmax.f32 %v3075_v60, 0.0  ;;  %7800 = vmatpush3.msk.msra.mxu1 %vm471_vm0, %v3201_v33  ;;  %v7715_v0 = vpop.f32.mrb[8].mxu0 }
 0x30f   : > { %3140 = vst.msk [vmem:[#allocation2 + $0x69] sm:$0xff] %vm225_vm1, %v3108_v62  ;;  %v3078_v2 = vadd.f32 %v7715_v0, %v9824_v1  ;;  %v2911_v27 = vpop.f32.mrb[9].mxu0  ;;  %v9856_v28 = vld [vmem:[#allocation2 + $0x30] sm:$0xff]  ;;  %v9858_v29 = vld [vmem:[#allocation2 + $0x38] sm:$0xff]  ;;  %7849 = vmatprep.subr.msk.mxu1 %vm471_vm0, %v9849_v61 }
 0x310   : > { %3139 = vst.msk [vmem:[#allocation2 + $0x61] sm:$0xff] %vm225_vm1, %v3107_v63  ;;  %v3077_v30 = vadd.f32 %v9824_v1, %v2911_v27  ;;  %7754 = vmatprep.mubr.msk.f32.mxu1 %vm225_vm1, %v9856_v28 }
 0x311   : > { %v3110_v31 = vmax.f32 %v3078_v2, 0.0  ;;  %7755 = vmatmul.mubr.msk.f32.gmra.mrb[2].mxu1 %vm225_vm1, %v9858_v29 }
 0x312   : > { %v3109_v32 = vmax.f32 %v3077_v30, 0.0  ;;  %v7718_v33 = vpop.f32.mrb[10].mxu0 }
 0x313   : > { %3142 = vst.msk [vmem:[#allocation2 + $0x81] sm:$0xff] %vm225_vm1, %v3110_v31  ;;  %v3080_v34 = vadd.f32 %v7718_v33, %v9824_v1  ;;  %v2921_v37 = vpop.f32.mrb[11].mxu0  ;;  %v9870_v39 = vld [vmem:[#allocation2 + $0x48] sm:$0xff]  ;;  %v9872_v40 = vld [vmem:[#allocation2 + $0x50] sm:$0xff] }
 0x314   : > { %3141 = vst.msk [vmem:[#allocation2 + $0x79] sm:$0xff] %vm225_vm1, %v3109_v32  ;;  %v3079_v41 = vadd.f32 %v9824_v1, %v2921_v37  ;;  %7757 = vmatprep.mubr.msk.f32.mxu1 %vm225_vm1, %v9870_v39 }
 0x315   : > { %v3112_v42 = vmax.f32 %v3080_v34, 0.0  ;;  %7758 = vmatmul.mubr.msk.f32.gmra.mrb[4].mxu1 %vm225_vm1, %v9872_v40 }
 0x316   : > { %v3111_v43 = vmax.f32 %v3079_v41, 0.0  ;;  %v7721_v44 = vpop.f32.mrb[12].mxu0 }
 0x317   : > { %3144 = vst.msk [vmem:[#allocation2 + $0x99] sm:$0xff] %vm225_vm1, %v3112_v42  ;;  %v3082_v45 = vadd.f32 %v7721_v44, %v9824_v1  ;;  %v2931_v46 = vpop.f32.mrb[13].mxu0  ;;  %v9882_v47 = vld [vmem:[#allocation2 + $0x60] sm:$0xff]  ;;  %v9884_v48 = vld [vmem:[#allocation2 + $0x68] sm:$0xff] }
 0x318   : > { %3143 = vst.msk [vmem:[#allocation2 + $0x91] sm:$0xff] %vm225_vm1, %v3111_v43  ;;  %v3081_v49 = vadd.f32 %v9824_v1, %v2931_v46  ;;  %7760 = vmatprep.mubr.msk.f32.mxu1 %vm225_vm1, %v9882_v47 }
 0x319   : > { %v3114_v50 = vmax.f32 %v3082_v45, 0.0  ;;  %7761 = vmatmul.mubr.msk.f32.gmra.mrb[6].mxu1 %vm225_vm1, %v9884_v48 }
 0x31a   : > { %v3113_v51 = vmax.f32 %v3081_v49, 0.0  ;;  %v7724_v52 = vpop.f32.mrb[14].mxu0 }
 0x31b   : > { %3146 = vst.msk [vmem:[#allocation2 + $0xb1] sm:$0xff] %vm225_vm1, %v3114_v50  ;;  %v3084_v53 = vadd.f32 %v7724_v52, %v9824_v1  ;;  %v2941_v54 = vpop.f32.mrb[15].mxu0  ;;  %v9894_v55 = vld [vmem:[#allocation2 + $0x78] sm:$0xff]  ;;  %v9896_v56 = vld [vmem:[#allocation2 + $0x80] sm:$0xff] }
 0x31c   : > { %3145 = vst.msk [vmem:[#allocation2 + $0xa9] sm:$0xff] %vm225_vm1, %v3113_v51  ;;  %v3083_v57 = vadd.f32 %v9824_v1, %v2941_v54  ;;  %7763 = vmatprep.mubr.msk.f32.mxu1 %vm225_vm1, %v9894_v55 }
 0x31d   : > { %v3116_v60 = vmax.f32 %v3084_v53, 0.0  ;;  %7764 = vmatmul.mubr.msk.f32.gmra.mrb[8].mxu1 %vm225_vm1, %v9896_v56 }
 0x31e   : > { %v3115_v62 = vmax.f32 %v3083_v57, 0.0  ;;  %v7727_v63 = vpop.f32.mrb[16].mxu0 }
 0x31f   : > { %3148 = vst.msk [vmem:[#allocation2 + $0xc9] sm:$0xff] %vm225_vm1, %v3116_v60  ;;  %v3086_v0 = vadd.f32 %v7727_v63, %v9824_v1  ;;  %v2951_v2 = vpop.f32.mrb[17].mxu0  ;;  %v9906_v27 = vld [vmem:[#allocation2 + $0x90] sm:$0xff]  ;;  %v9908_v30 = vld [vmem:[#allocation2 + $0x98] sm:$0xff] }
 0x320   : > { %3147 = vst.msk [vmem:[#allocation2 + $0xc1] sm:$0xff] %vm225_vm1, %v3115_v62  ;;  %v3085_v31 = vadd.f32 %v9824_v1, %v2951_v2  ;;  %7766 = vmatprep.mubr.msk.f32.mxu1 %vm225_vm1, %v9906_v27 }
 0x321   : > { %v3118_v32 = vmax.f32 %v3086_v0, 0.0  ;;  %7767 = vmatmul.mubr.msk.f32.gmra.mrb[10].mxu1 %vm225_vm1, %v9908_v30 }
 0x322   : > { %v3117_v33 = vmax.f32 %v3085_v31, 0.0  ;;  %v7730_v34 = vpop.f32.mrb[18].mxu0 }
 0x323   : > { %3150 = vst.msk [vmem:[#allocation2 + $0xe1] sm:$0xff] %vm225_vm1, %v3118_v32  ;;  %v3088_v37 = vadd.f32 %v7730_v34, %v9824_v1  ;;  %v2961_v41 = vpop.f32.mrb[19].mxu0  ;;  %v9918_v42 = vld [vmem:[#allocation2 + $0xa8] sm:$0xff]  ;;  %v9920_v43 = vld [vmem:[#allocation2 + $0xb0] sm:$0xff] }
 0x324   : > { %3149 = vst.msk [vmem:[#allocation2 + $0xd9] sm:$0xff] %vm225_vm1, %v3117_v33  ;;  %v3087_v44 = vadd.f32 %v9824_v1, %v2961_v41  ;;  %7769 = vmatprep.mubr.msk.f32.mxu1 %vm225_vm1, %v9918_v42 }
 0x325   : > { %v3120_v45 = vmax.f32 %v3088_v37, 0.0  ;;  %7770 = vmatmul.mubr.msk.f32.gmra.mrb[12].mxu1 %vm225_vm1, %v9920_v43 }
 0x326   : > { %v3119_v46 = vmax.f32 %v3087_v44, 0.0  ;;  %v7733_v49 = vpop.f32.mrb[20].mxu0 }
 0x327   : > { %3152 = vst.msk [vmem:[#allocation2 + $0xf9] sm:$0xff] %vm225_vm1, %v3120_v45  ;;  %v3090_v50 = vadd.f32 %v7733_v49, %v9824_v1  ;;  %v2971_v51 = vpop.f32.mrb[21].mxu0  ;;  %v9930_v52 = vld [vmem:[#allocation2 + $0xc0] sm:$0xff]  ;;  %v9932_v53 = vld [vmem:[#allocation2 + $0xc8] sm:$0xff] }
 0x328   : > { %3151 = vst.msk [vmem:[#allocation2 + $0xf1] sm:$0xff] %vm225_vm1, %v3119_v46  ;;  %v3089_v54 = vadd.f32 %v9824_v1, %v2971_v51  ;;  %7772 = vmatprep.mubr.msk.f32.mxu1 %vm225_vm1, %v9930_v52 }
 0x329   : > { %v3122_v57 = vmax.f32 %v3090_v50, 0.0  ;;  %7773 = vmatmul.mubr.msk.f32.gmra.mrb[14].mxu1 %vm225_vm1, %v9932_v53 }
 0x32a   : > { %v3121_v60 = vmax.f32 %v3089_v54, 0.0  ;;  %v7736_v62 = vpop.f32.mrb[22].mxu0 }
 0x32b   : > { %3154 = vst.msk [vmem:[#allocation2 + $0x111] sm:$0xff] %vm225_vm1, %v3122_v57  ;;  %v3092_v63 = vadd.f32 %v7736_v62, %v9824_v1  ;;  %v2981_v0 = vpop.f32.mrb[23].mxu0  ;;  %v9942_v2 = vld [vmem:[#allocation2 + $0xd8] sm:$0xff]  ;;  %v9944_v31 = vld [vmem:[#allocation2 + $0xe0] sm:$0xff] }
 0x32c   : > { %3153 = vst.msk [vmem:[#allocation2 + $0x109] sm:$0xff] %vm225_vm1, %v3121_v60  ;;  %v3091_v32 = vadd.f32 %v9824_v1, %v2981_v0  ;;  %7775 = vmatprep.mubr.msk.f32.mxu1 %vm225_vm1, %v9942_v2 }
 0x32d   : > { %v3124_v33 = vmax.f32 %v3092_v63, 0.0  ;;  %7776 = vmatmul.mubr.msk.f32.gmra.mrb[16].mxu1 %vm225_vm1, %v9944_v31 }
 0x32e   : > { %v3123_v34 = vmax.f32 %v3091_v32, 0.0  ;;  %v7739_v37 = vpop.f32.mrb[24].mxu0 }
 0x32f   : > { %3156 = vst.msk [vmem:[#allocation2 + $0x129] sm:$0xff] %vm225_vm1, %v3124_v33  ;;  %v3094_v41 = vadd.f32 %v7739_v37, %v9824_v1  ;;  %v2991_v44 = vpop.f32.mrb[25].mxu0  ;;  %v9954_v45 = vld [vmem:[#allocation2 + $0xf0] sm:$0xff]  ;;  %v9956_v46 = vld [vmem:[#allocation2 + $0xf8] sm:$0xff] }
 0x330   : > { %3155 = vst.msk [vmem:[#allocation2 + $0x121] sm:$0xff] %vm225_vm1, %v3123_v34  ;;  %v3093_v49 = vadd.f32 %v9824_v1, %v2991_v44  ;;  %7778 = vmatprep.mubr.msk.f32.mxu1 %vm225_vm1, %v9954_v45 }
 0x331   : > { %v3126_v50 = vmax.f32 %v3094_v41, 0.0  ;;  %7779 = vmatmul.mubr.msk.f32.gmra.mrb[18].mxu1 %vm225_vm1, %v9956_v46 }
 0x332   : > { %v3125_v51 = vmax.f32 %v3093_v49, 0.0  ;;  %v7742_v54 = vpop.f32.mrb[26].mxu0 }
 0x333   : > { %3158 = vst.msk [vmem:[#allocation2 + $0x141] sm:$0xff] %vm225_vm1, %v3126_v50  ;;  %v3096_v57 = vadd.f32 %v7742_v54, %v9824_v1  ;;  %v3001_v60 = vpop.f32.mrb[27].mxu0  ;;  %v9966_v62 = vld [vmem:[#allocation2 + $0x108] sm:$0xff]  ;;  %v9968_v63 = vld [vmem:[#allocation2 + $0x110] sm:$0xff] }
 0x334   : > { %3157 = vst.msk [vmem:[#allocation2 + $0x139] sm:$0xff] %vm225_vm1, %v3125_v51  ;;  %v3095_v0 = vadd.f32 %v9824_v1, %v3001_v60  ;;  %7781 = vmatprep.mubr.msk.f32.mxu1 %vm225_vm1, %v9966_v62 }
 0x335   : > { %v3128_v32 = vmax.f32 %v3096_v57, 0.0  ;;  %7782 = vmatmul.mubr.msk.f32.gmra.mrb[20].mxu1 %vm225_vm1, %v9968_v63 }
 0x336   : > { %v3127_v33 = vmax.f32 %v3095_v0, 0.0  ;;  %v7745_v34 = vpop.f32.mrb[28].mxu0 }
 0x337   : > { %3160 = vst.msk [vmem:[#allocation2 + $0x159] sm:$0xff] %vm225_vm1, %v3128_v32  ;;  %v3098_v37 = vadd.f32 %v7745_v34, %v9824_v1  ;;  %v3011_v41 = vpop.f32.mrb[29].mxu0  ;;  %v9978_v44 = vld [vmem:[#allocation2 + $0x120] sm:$0xff]  ;;  %v9980_v49 = vld [vmem:[#allocation2 + $0x128] sm:$0xff] }
 0x338   : > { %3159 = vst.msk [vmem:[#allocation2 + $0x151] sm:$0xff] %vm225_vm1, %v3127_v33  ;;  %v3097_v50 = vadd.f32 %v9824_v1, %v3011_v41  ;;  %7784 = vmatprep.mubr.msk.f32.mxu1 %vm225_vm1, %v9978_v44 }
 0x339   : > { %v3130_v51 = vmax.f32 %v3098_v37, 0.0  ;;  %7785 = vmatmul.mubr.msk.f32.gmra.mrb[22].mxu1 %vm225_vm1, %v9980_v49 }
 0x33a   : > { %v3129_v54 = vmax.f32 %v3097_v50, 0.0  ;;  %v7748_v57 = vpop.f32.mrb[30].mxu0 }
 0x33b   : > { %3162 = vst.msk [vmem:[#allocation2 + $0x171] sm:$0xff] %vm225_vm1, %v3130_v51  ;;  %v3100_v60 = vadd.f32 %v7748_v57, %v9824_v1  ;;  %v3021_v0 = vpop.f32.mrb[31].mxu0  ;;  %v9990_v32 = vld [vmem:[#allocation2 + $0x138] sm:$0xff]  ;;  %v9992_v34 = vld [vmem:[#allocation2 + $0x140] sm:$0xff] }
 0x33c   : > { %3161 = vst.msk [vmem:[#allocation2 + $0x169] sm:$0xff] %vm225_vm1, %v3129_v54  ;;  %v3099_v33 = vadd.f32 %v9824_v1, %v3021_v0  ;;  %7787 = vmatprep.mubr.msk.f32.mxu1 %vm225_vm1, %v9990_v32  ;;  %v3165_v0 = vld [vmem:[#allocation2] sm:$0xff] }
 0x33d   : > { %v3132_v37 = vmax.f32 %v3100_v60, 0.0  ;;  %7788 = vmatmul.mubr.msk.f32.gmra.mrb[24].mxu1 %vm225_vm1, %v9992_v34 }
 0x33e   : > { %v3131_v41 = vmax.f32 %v3099_v33, 0.0  ;;  %v3166_v33 = vld [vmem:[#allocation2 + $0x8] sm:$0xff] }
 0x33f   : > { %3164 = vst.msk [vmem:[#allocation2 + $0x189] sm:$0xff] %vm225_vm1, %v3132_v37  ;;  %v10001_v50 = vld [vmem:[#allocation2 + $0x150] sm:$0xff]  ;;  %v10003_v51 = vld [vmem:[#allocation2 + $0x158] sm:$0xff]  ;;  %v6496_v37 = vld [vmem:[%s10808_s3 + $0x4] sm:$0xf] }
 0x340   : > { %3163 = vst.msk [vmem:[#allocation2 + $0x181] sm:$0xff] %vm225_vm1, %v3131_v41  ;;  %7790 = vmatprep.mubr.msk.f32.mxu1 %vm225_vm1, %v10001_v50  ;;  %v10249_v41 = vld [vmem:[#allocation2 + $0x111] sm:$0xff] }
 0x341   : > { %7791 = vmatmul.mubr.msk.f32.gmra.mrb[26].mxu1 %vm225_vm1, %v10003_v51 }
 0x343   : > { %v10010_v1 = vld [vmem:[#allocation2 + $0x168] sm:$0xff]  ;;  %v10012_v54 = vld [vmem:[#allocation2 + $0x170] sm:$0xff] }
 0x344   : > { %7793 = vmatprep.mubr.msk.f32.mxu1 %vm225_vm1, %v10010_v1 }
 0x345   : > { %7794 = vmatmul.mubr.msk.f32.gmra.mrb[28].mxu1 %vm225_vm1, %v10012_v54 }
 0x347   : > { %v10018_v57 = vld [vmem:[#allocation2 + $0x180] sm:$0xff]  ;;  %v10020_v60 = vld [vmem:[#allocation2 + $0x188] sm:$0xff] }
 0x348   : > { %7796 = vmatprep.mubr.msk.f32.mxu1 %vm225_vm1, %v10018_v57 }
 0x349   : > { %7797 = vmatmul.mubr.msk.f32.gmra.mrb[30].mxu1 %vm225_vm1, %v10020_v60 }
 0x34a   : > { %7801 = vmatprep.mubr.msk.f32.mxu1 %vm225_vm1, %v3165_v0  ;;  %v10277_v0 = vld [vmem:[#allocation2 + $0x169] sm:$0xff] }
 0x34d   : > { %7802 = vmatmul.mubr.msk.f32.vlgmr.msra.gmra.mrb[0].mxu1 %vm225_vm1, %v3166_v33  ;;  %v10281_v33 = vld [vmem:[#allocation2 + $0x171] sm:$0xff] }
 0x34e   : > { %7850 = vmatpush3.msk.msra.mxu1 %vm471_vm0, %v9849_v61  ;;  %7804 = vmatprep.mubr.msk.f32.mxu1 %vm225_vm1, %v9838_v58  ;;  %v6530_v58 = vld [vmem:[%s10808_s3 + $0x10] sm:$0xf]  ;;  %v3200_v61 = vld [vmem:[#allocation2 + $0x1a0] sm:$0xff] }
 0x34f   : > { %7899 = vmatprep.subr.msk.mxu1 %vm471_vm0, %v6496_v37 }
 0x351   : > { %7805 = vmatmul.mubr.msk.f32.gmra.mrb[2].mxu1 %vm225_vm1, %v9840_v59  ;;  %v3199_v59 = vld [vmem:[#allocation2 + $0x198] sm:$0xff] }
 0x352   : > { %7807 = vmatprep.mubr.msk.f32.mxu1 %vm225_vm1, %v9856_v28 }
 0x355   : > { %7808 = vmatmul.mubr.msk.f32.gmra.mrb[4].mxu1 %vm225_vm1, %v9858_v29 }
 0x356   : > { %7810 = vmatprep.mubr.msk.f32.mxu1 %vm225_vm1, %v9870_v39 }
 0x359   : > { %7811 = vmatmul.mubr.msk.f32.gmra.mrb[6].mxu1 %vm225_vm1, %v9872_v40 }
 0x35a   : > { %7813 = vmatprep.mubr.msk.f32.mxu1 %vm225_vm1, %v9882_v47 }
 0x35d   : > { %7814 = vmatmul.mubr.msk.f32.gmra.mrb[8].mxu1 %vm225_vm1, %v9884_v48 }
 0x35e   : > { %7816 = vmatprep.mubr.msk.f32.mxu1 %vm225_vm1, %v9894_v55 }
 0x361   : > { %7817 = vmatmul.mubr.msk.f32.gmra.mrb[10].mxu1 %vm225_vm1, %v9896_v56 }
 0x362   : > { %7819 = vmatprep.mubr.msk.f32.mxu1 %vm225_vm1, %v9906_v27 }
 0x365   : > { %7820 = vmatmul.mubr.msk.f32.gmra.mrb[12].mxu1 %vm225_vm1, %v9908_v30 }
 0x366   : > { %7822 = vmatprep.mubr.msk.f32.mxu1 %vm225_vm1, %v9918_v42 }
 0x369   : > { %7823 = vmatmul.mubr.msk.f32.gmra.mrb[14].mxu1 %vm225_vm1, %v9920_v43 }
 0x36a   : > { %7825 = vmatprep.mubr.msk.f32.mxu1 %vm225_vm1, %v9930_v52 }
 0x36d   : > { %7826 = vmatmul.mubr.msk.f32.gmra.mrb[16].mxu1 %vm225_vm1, %v9932_v53 }
 0x36e   : > { %7828 = vmatprep.mubr.msk.f32.mxu1 %vm225_vm1, %v9942_v2 }
 0x371   : > { %7829 = vmatmul.mubr.msk.f32.gmra.mrb[18].mxu1 %vm225_vm1, %v9944_v31 }
 0x372   : > { %7831 = vmatprep.mubr.msk.f32.mxu1 %vm225_vm1, %v9954_v45 }
 0x375   : > { %7832 = vmatmul.mubr.msk.f32.gmra.mrb[20].mxu1 %vm225_vm1, %v9956_v46 }
 0x376   : > { %7834 = vmatprep.mubr.msk.f32.mxu1 %vm225_vm1, %v9966_v62 }
 0x379   : > { %7835 = vmatmul.mubr.msk.f32.gmra.mrb[22].mxu1 %vm225_vm1, %v9968_v63 }
 0x37a   : > { %7837 = vmatprep.mubr.msk.f32.mxu1 %vm225_vm1, %v9978_v44 }
 0x37d   : > { %7838 = vmatmul.mubr.msk.f32.gmra.mrb[24].mxu1 %vm225_vm1, %v9980_v49 }
 0x37e   : > { %7840 = vmatprep.mubr.msk.f32.mxu1 %vm225_vm1, %v9990_v32 }
 0x381   : > { %7841 = vmatmul.mubr.msk.f32.gmra.mrb[26].mxu1 %vm225_vm1, %v9992_v34 }
 0x382   : > { %7843 = vmatprep.mubr.msk.f32.mxu1 %vm225_vm1, %v10001_v50 }
 0x385   : > { %7844 = vmatmul.mubr.msk.f32.gmra.mrb[28].mxu1 %vm225_vm1, %v10003_v51 }
 0x386   : > { %7846 = vmatprep.mubr.msk.f32.mxu1 %vm225_vm1, %v10010_v1 }
 0x389   : > { %7847 = vmatmul.mubr.msk.f32.gmra.mrb[30].mxu1 %vm225_vm1, %v10012_v54 }
 0x38a   : > { %7851 = vmatprep.mubr.msk.f32.mxu1 %vm225_vm1, %v9856_v28  ;;  %v4030_v28 = vld [vmem:[#allocation2 + $0x1] sm:$0xff] }
 0x38d   : > { %7852 = vmatmul.mubr.msk.f32.vlgmr.msra.gmra.mrb[0].mxu1 %vm225_vm1, %v9858_v29  ;;  %v4031_v29 = vld [vmem:[#allocation2 + $0x9] sm:$0xff] }
 0x38e   : > { %7900 = vmatpush3.msk.msra.mxu1 %vm471_vm0, %v6496_v37  ;;  %7854 = vmatprep.mubr.msk.f32.mxu1 %vm225_vm1, %v9870_v39  ;;  %v10165_v39 = vld [vmem:[%s10808_s3 + $0x1c] sm:$0xf]  ;;  %v6598_v37 = vld [vmem:[%s10808_s3 + $0x8] sm:$0xf] }
 0x38f   : > { %7949 = vmatprep.subr.msk.mxu1 %vm471_vm0, %v6530_v58 }
 0x391   : > { %7855 = vmatmul.mubr.msk.f32.gmra.mrb[2].mxu1 %vm225_vm1, %v9872_v40  ;;  %v4032_v40 = vld [vmem:[#allocation2 + $0x19] sm:$0xff] }
 0x392   : > { %7857 = vmatprep.mubr.msk.f32.mxu1 %vm225_vm1, %v9882_v47  ;;  %v4033_v47 = vld [vmem:[#allocation2 + $0x21] sm:$0xff] }
 0x395   : > { %7858 = vmatmul.mubr.msk.f32.gmra.mrb[4].mxu1 %vm225_vm1, %v9884_v48  ;;  %v10173_v48 = vld [vmem:[#allocation2 + $0x31] sm:$0xff] }
 0x396   : > { %7860 = vmatprep.mubr.msk.f32.mxu1 %vm225_vm1, %v9894_v55  ;;  %v10177_v55 = vld [vmem:[#allocation2 + $0x39] sm:$0xff] }
 0x399   : > { %7861 = vmatmul.mubr.msk.f32.gmra.mrb[6].mxu1 %vm225_vm1, %v9896_v56  ;;  %v10181_v56 = vld [vmem:[#allocation2 + $0x49] sm:$0xff] }
 0x39a   : > { %7863 = vmatprep.mubr.msk.f32.mxu1 %vm225_vm1, %v9906_v27  ;;  %v10185_v27 = vld [vmem:[#allocation2 + $0x51] sm:$0xff] }
 0x39d   : > { %7864 = vmatmul.mubr.msk.f32.gmra.mrb[8].mxu1 %vm225_vm1, %v9908_v30  ;;  %v10189_v30 = vld [vmem:[#allocation2 + $0x61] sm:$0xff] }
 0x39e   : > { %7866 = vmatprep.mubr.msk.f32.mxu1 %vm225_vm1, %v9918_v42  ;;  %v10193_v42 = vld [vmem:[#allocation2 + $0x69] sm:$0xff] }
 0x3a1   : > { %7867 = vmatmul.mubr.msk.f32.gmra.mrb[10].mxu1 %vm225_vm1, %v9920_v43  ;;  %v10197_v43 = vld [vmem:[#allocation2 + $0x79] sm:$0xff] }
 0x3a2   : > { %7869 = vmatprep.mubr.msk.f32.mxu1 %vm225_vm1, %v9930_v52  ;;  %v10201_v52 = vld [vmem:[#allocation2 + $0x81] sm:$0xff] }
 0x3a5   : > { %7870 = vmatmul.mubr.msk.f32.gmra.mrb[12].mxu1 %vm225_vm1, %v9932_v53  ;;  %v10205_v53 = vld [vmem:[#allocation2 + $0x91] sm:$0xff] }
 0x3a6   : > { %7872 = vmatprep.mubr.msk.f32.mxu1 %vm225_vm1, %v9942_v2  ;;  %v10209_v2 = vld [vmem:[#allocation2 + $0x99] sm:$0xff] }
 0x3a9   : > { %7873 = vmatmul.mubr.msk.f32.gmra.mrb[14].mxu1 %vm225_vm1, %v9944_v31  ;;  %v10213_v31 = vld [vmem:[#allocation2 + $0xa9] sm:$0xff] }
 0x3aa   : > { %7875 = vmatprep.mubr.msk.f32.mxu1 %vm225_vm1, %v9954_v45  ;;  %v10217_v45 = vld [vmem:[#allocation2 + $0xb1] sm:$0xff] }
 0x3ad   : > { %7876 = vmatmul.mubr.msk.f32.gmra.mrb[16].mxu1 %vm225_vm1, %v9956_v46  ;;  %v10221_v46 = vld [vmem:[#allocation2 + $0xc1] sm:$0xff] }
 0x3ae   : > { %7878 = vmatprep.mubr.msk.f32.mxu1 %vm225_vm1, %v9966_v62  ;;  %v10225_v62 = vld [vmem:[#allocation2 + $0xc9] sm:$0xff] }
 0x3b1   : > { %7879 = vmatmul.mubr.msk.f32.gmra.mrb[18].mxu1 %vm225_vm1, %v9968_v63  ;;  %v10229_v63 = vld [vmem:[#allocation2 + $0xd9] sm:$0xff] }
 0x3b2   : > { %7881 = vmatprep.mubr.msk.f32.mxu1 %vm225_vm1, %v9978_v44  ;;  %v10233_v44 = vld [vmem:[#allocation2 + $0xe1] sm:$0xff] }
 0x3b5   : > { %7882 = vmatmul.mubr.msk.f32.gmra.mrb[20].mxu1 %vm225_vm1, %v9980_v49  ;;  %v10237_v49 = vld [vmem:[#allocation2 + $0xf1] sm:$0xff] }
 0x3b6   : > { %7884 = vmatprep.mubr.msk.f32.mxu1 %vm225_vm1, %v9990_v32  ;;  %v10241_v32 = vld [vmem:[#allocation2 + $0xf9] sm:$0xff] }
 0x3b9   : > { %7885 = vmatmul.mubr.msk.f32.gmra.mrb[22].mxu1 %vm225_vm1, %v9992_v34  ;;  %v10245_v34 = vld [vmem:[#allocation2 + $0x109] sm:$0xff] }
 0x3ba   : > { %7887 = vmatprep.mubr.msk.f32.mxu1 %vm225_vm1, %v10001_v50  ;;  %v10253_v50 = vld [vmem:[#allocation2 + $0x121] sm:$0xff] }
 0x3bd   : > { %7888 = vmatmul.mubr.msk.f32.gmra.mrb[24].mxu1 %vm225_vm1, %v10003_v51  ;;  %v10257_v51 = vld [vmem:[#allocation2 + $0x129] sm:$0xff] }
 0x3be   : > { %7890 = vmatprep.mubr.msk.f32.mxu1 %vm225_vm1, %v10010_v1  ;;  %v10261_v1 = vld [vmem:[#allocation2 + $0x139] sm:$0xff] }
 0x3c1   : > { %7891 = vmatmul.mubr.msk.f32.gmra.mrb[26].mxu1 %vm225_vm1, %v10012_v54  ;;  %v10265_v54 = vld [vmem:[#allocation2 + $0x141] sm:$0xff] }
 0x3c2   : > { %7893 = vmatprep.mubr.msk.f32.mxu1 %vm225_vm1, %v10018_v57  ;;  %v10269_v57 = vld [vmem:[#allocation2 + $0x151] sm:$0xff] }
 0x3c5   : > { %7894 = vmatmul.mubr.msk.f32.gmra.mrb[28].mxu1 %vm225_vm1, %v10020_v60  ;;  %v10273_v60 = vld [vmem:[#allocation2 + $0x159] sm:$0xff] }
 0x3c6   : > { %7896 = vmatprep.mubr.msk.f32.mxu1 %vm225_vm1, %v3199_v59  ;;  %v4063_v59 = vld [vmem:[#allocation2 + $0x189] sm:$0xff] }
 0x3c9   : > { %7897 = vmatmul.mubr.msk.f32.gmra.mrb[30].mxu1 %vm225_vm1, %v3200_v61  ;;  %v6632_v61 = vld [vmem:[%s10808_s3 + $0x14] sm:$0xf] }
 0x3ca   : > { %7901 = vmatprep.mubr.msk.f32.mxu1 %vm225_vm1, %v4030_v28  ;;  %v4064_v28 = vld [vmem:[#allocation2 + $0x199] sm:$0xff] }
 0x3cd   : > { %7902 = vmatmul.mubr.msk.f32.vlgmr.msra.gmra.mrb[0].mxu1 %vm225_vm1, %v4031_v29  ;;  %v4065_v29 = vld [vmem:[#allocation2 + $0x1a1] sm:$0xff] }
 0x3ce   : > { %7950 = vmatpush3.msk.msra.mxu1 %vm471_vm0, %v6530_v58  ;;  %7904 = vmatprep.mubr.msk.f32.mxu1 %vm225_vm1, %v4032_v40  ;;  %v4062_v58 = vld [vmem:[#allocation2 + $0x181] sm:$0xff] }
 0x3cf   : > { %7999 = vmatprep.subr.msk.mxu1 %vm471_vm0, %v10165_v39 }
 0x3d1   : > { %7905 = vmatmul.mubr.msk.f32.gmra.mrb[2].mxu1 %vm225_vm1, %v4033_v47 }
 0x3d2   : > { %7907 = vmatprep.mubr.msk.f32.mxu1 %vm225_vm1, %v10173_v48 }
 0x3d5   : > { %7908 = vmatmul.mubr.msk.f32.gmra.mrb[4].mxu1 %vm225_vm1, %v10177_v55 }
 0x3d6   : > { %7910 = vmatprep.mubr.msk.f32.mxu1 %vm225_vm1, %v10181_v56 }
 0x3d9   : > { %7911 = vmatmul.mubr.msk.f32.gmra.mrb[6].mxu1 %vm225_vm1, %v10185_v27 }
 0x3da   : > { %7913 = vmatprep.mubr.msk.f32.mxu1 %vm225_vm1, %v10189_v30 }
 0x3dd   : > { %7914 = vmatmul.mubr.msk.f32.gmra.mrb[8].mxu1 %vm225_vm1, %v10193_v42 }
 0x3de   : > { %7916 = vmatprep.mubr.msk.f32.mxu1 %vm225_vm1, %v10197_v43 }
 0x3e1   : > { %7917 = vmatmul.mubr.msk.f32.gmra.mrb[10].mxu1 %vm225_vm1, %v10201_v52 }
 0x3e2   : > { %7919 = vmatprep.mubr.msk.f32.mxu1 %vm225_vm1, %v10205_v53 }
 0x3e5   : > { %7920 = vmatmul.mubr.msk.f32.gmra.mrb[12].mxu1 %vm225_vm1, %v10209_v2 }
 0x3e6   : > { %7922 = vmatprep.mubr.msk.f32.mxu1 %vm225_vm1, %v10213_v31 }
 0x3e9   : > { %7923 = vmatmul.mubr.msk.f32.gmra.mrb[14].mxu1 %vm225_vm1, %v10217_v45 }
 0x3ea   : > { %7925 = vmatprep.mubr.msk.f32.mxu1 %vm225_vm1, %v10221_v46 }
 0x3ed   : > { %7926 = vmatmul.mubr.msk.f32.gmra.mrb[16].mxu1 %vm225_vm1, %v10225_v62 }
 0x3ee   : > { %7928 = vmatprep.mubr.msk.f32.mxu1 %vm225_vm1, %v10229_v63 }
 0x3f1   : > { %7929 = vmatmul.mubr.msk.f32.gmra.mrb[18].mxu1 %vm225_vm1, %v10233_v44 }
 0x3f2   : > { %7931 = vmatprep.mubr.msk.f32.mxu1 %vm225_vm1, %v10237_v49 }
 0x3f5   : > { %7932 = vmatmul.mubr.msk.f32.gmra.mrb[20].mxu1 %vm225_vm1, %v10241_v32 }
 0x3f6   : > { %7934 = vmatprep.mubr.msk.f32.mxu1 %vm225_vm1, %v10245_v34 }
 0x3f9   : > { %7935 = vmatmul.mubr.msk.f32.gmra.mrb[22].mxu1 %vm225_vm1, %v10249_v41 }
 0x3fa   : > { %7937 = vmatprep.mubr.msk.f32.mxu1 %vm225_vm1, %v10253_v50 }
 0x3fd   : > { %7938 = vmatmul.mubr.msk.f32.gmra.mrb[24].mxu1 %vm225_vm1, %v10257_v51 }
 0x3fe   : > { %7940 = vmatprep.mubr.msk.f32.mxu1 %vm225_vm1, %v10261_v1 }
 0x401   : > { %7941 = vmatmul.mubr.msk.f32.gmra.mrb[26].mxu1 %vm225_vm1, %v10265_v54 }
 0x402   : > { %7943 = vmatprep.mubr.msk.f32.mxu1 %vm225_vm1, %v10269_v57 }
 0x405   : > { %7944 = vmatmul.mubr.msk.f32.gmra.mrb[28].mxu1 %vm225_vm1, %v10273_v60 }
 0x406   : > { %7946 = vmatprep.mubr.msk.f32.mxu1 %vm225_vm1, %v10277_v0 }
 0x409   : > { %7947 = vmatmul.mubr.msk.f32.gmra.mrb[30].mxu1 %vm225_vm1, %v10281_v33 }
 0x40a   : > { %7951 = vmatprep.mubr.msk.f32.mxu1 %vm225_vm1, %v4032_v40  ;;  %v4961_v40 = vld [vmem:[#allocation2 + $0xa] sm:$0xff] }
 0x40d   : > { %7952 = vmatmul.mubr.msk.f32.vlgmr.msra.gmra.mrb[0].mxu1 %vm225_vm1, %v4033_v47  ;;  %v10420_v47 = vld [vmem:[%s10808_s3 + $0x20] sm:$0xf] }
 0x40e   : > { %8000 = vmatpush3.msk.msra.mxu1 %vm471_vm0, %v10165_v39  ;;  %7954 = vmatprep.mubr.msk.f32.mxu1 %vm225_vm1, %v10173_v48  ;;  %v4960_v39 = vld [vmem:[#allocation2 + $0x2] sm:$0xff] }
 0x40f   : > { %8049 = vmatprep.subr.msk.mxu1 %vm471_vm0, %v6598_v37 }
 0x411   : > { %7955 = vmatmul.mubr.msk.f32.gmra.mrb[2].mxu1 %vm225_vm1, %v10177_v55 }
 0x412   : > { %7957 = vmatprep.mubr.msk.f32.mxu1 %vm225_vm1, %v10181_v56 }
 0x415   : > { %7958 = vmatmul.mubr.msk.f32.gmra.mrb[4].mxu1 %vm225_vm1, %v10185_v27 }
 0x416   : > { %7960 = vmatprep.mubr.msk.f32.mxu1 %vm225_vm1, %v10189_v30 }
 0x419   : > { %7961 = vmatmul.mubr.msk.f32.gmra.mrb[6].mxu1 %vm225_vm1, %v10193_v42 }
 0x41a   : > { %7963 = vmatprep.mubr.msk.f32.mxu1 %vm225_vm1, %v10197_v43 }
 0x41d   : > { %7964 = vmatmul.mubr.msk.f32.gmra.mrb[8].mxu1 %vm225_vm1, %v10201_v52 }
 0x41e   : > { %7966 = vmatprep.mubr.msk.f32.mxu1 %vm225_vm1, %v10205_v53 }
 0x421   : > { %7967 = vmatmul.mubr.msk.f32.gmra.mrb[10].mxu1 %vm225_vm1, %v10209_v2 }
 0x422   : > { %7969 = vmatprep.mubr.msk.f32.mxu1 %vm225_vm1, %v10213_v31 }
 0x425   : > { %7970 = vmatmul.mubr.msk.f32.gmra.mrb[12].mxu1 %vm225_vm1, %v10217_v45 }
 0x426   : > { %7972 = vmatprep.mubr.msk.f32.mxu1 %vm225_vm1, %v10221_v46 }
 0x429   : > { %7973 = vmatmul.mubr.msk.f32.gmra.mrb[14].mxu1 %vm225_vm1, %v10225_v62 }
 0x42a   : > { %7975 = vmatprep.mubr.msk.f32.mxu1 %vm225_vm1, %v10229_v63 }
 0x42d   : > { %7976 = vmatmul.mubr.msk.f32.gmra.mrb[16].mxu1 %vm225_vm1, %v10233_v44 }
 0x42e   : > { %7978 = vmatprep.mubr.msk.f32.mxu1 %vm225_vm1, %v10237_v49 }
 0x431   : > { %7979 = vmatmul.mubr.msk.f32.gmra.mrb[18].mxu1 %vm225_vm1, %v10241_v32 }
 0x432   : > { %7981 = vmatprep.mubr.msk.f32.mxu1 %vm225_vm1, %v10245_v34 }
 0x435   : > { %7982 = vmatmul.mubr.msk.f32.gmra.mrb[20].mxu1 %vm225_vm1, %v10249_v41 }
 0x436   : > { %7984 = vmatprep.mubr.msk.f32.mxu1 %vm225_vm1, %v10253_v50 }
 0x439   : > { %7985 = vmatmul.mubr.msk.f32.gmra.mrb[22].mxu1 %vm225_vm1, %v10257_v51 }
 0x43a   : > { %7987 = vmatprep.mubr.msk.f32.mxu1 %vm225_vm1, %v10261_v1 }
 0x43d   : > { %7988 = vmatmul.mubr.msk.f32.gmra.mrb[24].mxu1 %vm225_vm1, %v10265_v54 }
 0x43e   : > { %7990 = vmatprep.mubr.msk.f32.mxu1 %vm225_vm1, %v10269_v57 }
 0x441   : > { %7991 = vmatmul.mubr.msk.f32.gmra.mrb[26].mxu1 %vm225_vm1, %v10273_v60 }
 0x442   : > { %7993 = vmatprep.mubr.msk.f32.mxu1 %vm225_vm1, %v10277_v0 }
 0x445   : > { %7994 = vmatmul.mubr.msk.f32.gmra.mrb[28].mxu1 %vm225_vm1, %v10281_v33 }
 0x446   : > { %7996 = vmatprep.mubr.msk.f32.mxu1 %vm225_vm1, %v4062_v58 }
 0x449   : > { %7997 = vmatmul.mubr.msk.f32.gmra.mrb[30].mxu1 %vm225_vm1, %v4063_v59 }
 0x44a   : > { %8001 = vmatprep.mubr.msk.f32.mxu1 %vm225_vm1, %v10173_v48  ;;  %v4962_v48 = vld [vmem:[#allocation2 + $0x1a] sm:$0xff] }
 0x44d   : > { %8002 = vmatmul.mubr.msk.f32.vlgmr.msra.gmra.mrb[0].mxu1 %vm225_vm1, %v10177_v55  ;;  %v4963_v55 = vld [vmem:[#allocation2 + $0x22] sm:$0xff] }
 0x44e   : > { %8050 = vmatpush3.msk.msra.mxu1 %vm471_vm0, %v6598_v37  ;;  %8004 = vmatprep.mubr.msk.f32.mxu1 %vm225_vm1, %v10181_v56  ;;  %v10428_v56 = vld [vmem:[#allocation2 + $0x32] sm:$0xff]  ;;  %v10532_v37 = vld [vmem:[#allocation2 + $0x16a] sm:$0xff] }
 0x44f   : > { %8099 = vmatprep.subr.msk.mxu1 %vm471_vm0, %v6632_v61 }
 0x451   : > { %8005 = vmatmul.mubr.msk.f32.gmra.mrb[2].mxu1 %vm225_vm1, %v10185_v27  ;;  %v10432_v27 = vld [vmem:[#allocation2 + $0x3a] sm:$0xff] }
 0x452   : > { %8007 = vmatprep.mubr.msk.f32.mxu1 %vm225_vm1, %v10189_v30  ;;  %v10436_v30 = vld [vmem:[#allocation2 + $0x4a] sm:$0xff] }
 0x455   : > { %8008 = vmatmul.mubr.msk.f32.gmra.mrb[4].mxu1 %vm225_vm1, %v10193_v42  ;;  %v10440_v42 = vld [vmem:[#allocation2 + $0x52] sm:$0xff] }
 0x456   : > { %8010 = vmatprep.mubr.msk.f32.mxu1 %vm225_vm1, %v10197_v43  ;;  %v10444_v43 = vld [vmem:[#allocation2 + $0x62] sm:$0xff] }
 0x459   : > { %8011 = vmatmul.mubr.msk.f32.gmra.mrb[6].mxu1 %vm225_vm1, %v10201_v52  ;;  %v10448_v52 = vld [vmem:[#allocation2 + $0x6a] sm:$0xff] }
 0x45a   : > { %8013 = vmatprep.mubr.msk.f32.mxu1 %vm225_vm1, %v10205_v53  ;;  %v10452_v53 = vld [vmem:[#allocation2 + $0x7a] sm:$0xff] }
 0x45d   : > { %8014 = vmatmul.mubr.msk.f32.gmra.mrb[8].mxu1 %vm225_vm1, %v10209_v2  ;;  %v10456_v2 = vld [vmem:[#allocation2 + $0x82] sm:$0xff] }
 0x45e   : > { %8016 = vmatprep.mubr.msk.f32.mxu1 %vm225_vm1, %v10213_v31  ;;  %v10460_v31 = vld [vmem:[#allocation2 + $0x92] sm:$0xff] }
 0x461   : > { %8017 = vmatmul.mubr.msk.f32.gmra.mrb[10].mxu1 %vm225_vm1, %v10217_v45  ;;  %v10464_v45 = vld [vmem:[#allocation2 + $0x9a] sm:$0xff] }
 0x462   : > { %8019 = vmatprep.mubr.msk.f32.mxu1 %vm225_vm1, %v10221_v46  ;;  %v10468_v46 = vld [vmem:[#allocation2 + $0xaa] sm:$0xff] }
 0x465   : > { %8020 = vmatmul.mubr.msk.f32.gmra.mrb[12].mxu1 %vm225_vm1, %v10225_v62  ;;  %v10472_v62 = vld [vmem:[#allocation2 + $0xb2] sm:$0xff] }
 0x466   : > { %8022 = vmatprep.mubr.msk.f32.mxu1 %vm225_vm1, %v10229_v63  ;;  %v10476_v63 = vld [vmem:[#allocation2 + $0xc2] sm:$0xff] }
 0x469   : > { %8023 = vmatmul.mubr.msk.f32.gmra.mrb[14].mxu1 %vm225_vm1, %v10233_v44  ;;  %v10480_v44 = vld [vmem:[#allocation2 + $0xca] sm:$0xff] }
 0x46a   : > { %8025 = vmatprep.mubr.msk.f32.mxu1 %vm225_vm1, %v10237_v49  ;;  %v10484_v49 = vld [vmem:[#allocation2 + $0xda] sm:$0xff] }
 0x46d   : > { %8026 = vmatmul.mubr.msk.f32.gmra.mrb[16].mxu1 %vm225_vm1, %v10241_v32  ;;  %v10488_v32 = vld [vmem:[#allocation2 + $0xe2] sm:$0xff] }
 0x46e   : > { %8028 = vmatprep.mubr.msk.f32.mxu1 %vm225_vm1, %v10245_v34  ;;  %v10492_v34 = vld [vmem:[#allocation2 + $0xf2] sm:$0xff] }
 0x471   : > { %8029 = vmatmul.mubr.msk.f32.gmra.mrb[18].mxu1 %vm225_vm1, %v10249_v41  ;;  %v10496_v41 = vld [vmem:[#allocation2 + $0xfa] sm:$0xff] }
 0x472   : > { %8031 = vmatprep.mubr.msk.f32.mxu1 %vm225_vm1, %v10253_v50  ;;  %v10500_v50 = vld [vmem:[#allocation2 + $0x10a] sm:$0xff] }
 0x475   : > { %8032 = vmatmul.mubr.msk.f32.gmra.mrb[20].mxu1 %vm225_vm1, %v10257_v51  ;;  %v10504_v51 = vld [vmem:[#allocation2 + $0x112] sm:$0xff] }
 0x476   : > { %8034 = vmatprep.mubr.msk.f32.mxu1 %vm225_vm1, %v10261_v1  ;;  %v10508_v1 = vld [vmem:[#allocation2 + $0x122] sm:$0xff] }
 0x479   : > { %8035 = vmatmul.mubr.msk.f32.gmra.mrb[22].mxu1 %vm225_vm1, %v10265_v54  ;;  %v10512_v54 = vld [vmem:[#allocation2 + $0x12a] sm:$0xff] }
 0x47a   : > { %8037 = vmatprep.mubr.msk.f32.mxu1 %vm225_vm1, %v10269_v57  ;;  %v10516_v57 = vld [vmem:[#allocation2 + $0x13a] sm:$0xff] }
 0x47d   : > { %8038 = vmatmul.mubr.msk.f32.gmra.mrb[24].mxu1 %vm225_vm1, %v10273_v60  ;;  %v10520_v60 = vld [vmem:[#allocation2 + $0x142] sm:$0xff] }
 0x47e   : > { %8040 = vmatprep.mubr.msk.f32.mxu1 %vm225_vm1, %v10277_v0  ;;  %v10524_v0 = vld [vmem:[#allocation2 + $0x152] sm:$0xff] }
 0x481   : > { %8041 = vmatmul.mubr.msk.f32.gmra.mrb[26].mxu1 %vm225_vm1, %v10281_v33  ;;  %v10528_v33 = vld [vmem:[#allocation2 + $0x15a] sm:$0xff] }
 0x482   : > { %8043 = vmatprep.mubr.msk.f32.mxu1 %vm225_vm1, %v4062_v58  ;;  %v10536_v58 = vld [vmem:[#allocation2 + $0x172] sm:$0xff] }
 0x485   : > { %8044 = vmatmul.mubr.msk.f32.gmra.mrb[28].mxu1 %vm225_vm1, %v4063_v59  ;;  %v4992_v59 = vld [vmem:[#allocation2 + $0x182] sm:$0xff] }
 0x486   : > { %8046 = vmatprep.mubr.msk.f32.mxu1 %vm225_vm1, %v4064_v28  ;;  %v4994_v28 = vld [vmem:[#allocation2 + $0x19a] sm:$0xff] }
 0x489   : > { %8047 = vmatmul.mubr.msk.f32.gmra.mrb[30].mxu1 %vm225_vm1, %v4065_v29  ;;  %v4995_v29 = vld [vmem:[#allocation2 + $0x1a2] sm:$0xff] }
 0x48a   : > { %8051 = vmatprep.mubr.msk.f32.mxu1 %vm225_vm1, %v4960_v39  ;;  %v10665_v39 = vld [vmem:[%s10809_s4] ss:$0 sm:$0xff] }
 0x48d   : > { %8052 = vmatmul.mubr.msk.f32.vlgmr.msra.gmra.mrb[0].mxu1 %vm225_vm1, %v4961_v40 }
 0x48e   : > { %8100 = vmatpush3.msk.msra.mxu1 %vm471_vm0, %v6632_v61  ;;  %8054 = vmatprep.mubr.msk.f32.mxu1 %vm225_vm1, %v4962_v48  ;;  %v4993_v61 = vld [vmem:[#allocation2 + $0x18a] sm:$0xff] }
 0x48f   : > { %8149 = vmatprep.subr.msk.mxu1 %vm471_vm0, %v10420_v47 }
 0x491   : > { %8055 = vmatmul.mubr.msk.f32.gmra.mrb[2].mxu1 %vm225_vm1, %v4963_v55 }
 0x492   : > { %8057 = vmatprep.mubr.msk.f32.mxu1 %vm225_vm1, %v10428_v56 }
 0x495   : > { %8058 = vmatmul.mubr.msk.f32.gmra.mrb[4].mxu1 %vm225_vm1, %v10432_v27 }
 0x496   : > { %8060 = vmatprep.mubr.msk.f32.mxu1 %vm225_vm1, %v10436_v30 }
 0x499   : > { %8061 = vmatmul.mubr.msk.f32.gmra.mrb[6].mxu1 %vm225_vm1, %v10440_v42 }
 0x49a   : > { %8063 = vmatprep.mubr.msk.f32.mxu1 %vm225_vm1, %v10444_v43 }
 0x49d   : > { %8064 = vmatmul.mubr.msk.f32.gmra.mrb[8].mxu1 %vm225_vm1, %v10448_v52 }
 0x49e   : > { %8066 = vmatprep.mubr.msk.f32.mxu1 %vm225_vm1, %v10452_v53 }
 0x4a1   : > { %8067 = vmatmul.mubr.msk.f32.gmra.mrb[10].mxu1 %vm225_vm1, %v10456_v2 }
 0x4a2   : > { %8069 = vmatprep.mubr.msk.f32.mxu1 %vm225_vm1, %v10460_v31 }
 0x4a5   : > { %8070 = vmatmul.mubr.msk.f32.gmra.mrb[12].mxu1 %vm225_vm1, %v10464_v45 }
 0x4a6   : > { %8072 = vmatprep.mubr.msk.f32.mxu1 %vm225_vm1, %v10468_v46 }
 0x4a9   : > { %8073 = vmatmul.mubr.msk.f32.gmra.mrb[14].mxu1 %vm225_vm1, %v10472_v62 }
 0x4aa   : > { %8075 = vmatprep.mubr.msk.f32.mxu1 %vm225_vm1, %v10476_v63 }
 0x4ad   : > { %8076 = vmatmul.mubr.msk.f32.gmra.mrb[16].mxu1 %vm225_vm1, %v10480_v44 }
 0x4ae   : > { %8078 = vmatprep.mubr.msk.f32.mxu1 %vm225_vm1, %v10484_v49 }
 0x4b1   : > { %8079 = vmatmul.mubr.msk.f32.gmra.mrb[18].mxu1 %vm225_vm1, %v10488_v32 }
 0x4b2   : > { %8081 = vmatprep.mubr.msk.f32.mxu1 %vm225_vm1, %v10492_v34 }
 0x4b5   : > { %8082 = vmatmul.mubr.msk.f32.gmra.mrb[20].mxu1 %vm225_vm1, %v10496_v41 }
 0x4b6   : > { %8084 = vmatprep.mubr.msk.f32.mxu1 %vm225_vm1, %v10500_v50 }
 0x4b9   : > { %8085 = vmatmul.mubr.msk.f32.gmra.mrb[22].mxu1 %vm225_vm1, %v10504_v51 }
 0x4ba   : > { %8087 = vmatprep.mubr.msk.f32.mxu1 %vm225_vm1, %v10508_v1 }
 0x4bd   : > { %8088 = vmatmul.mubr.msk.f32.gmra.mrb[24].mxu1 %vm225_vm1, %v10512_v54 }
 0x4be   : > { %8090 = vmatprep.mubr.msk.f32.mxu1 %vm225_vm1, %v10516_v57 }
 0x4c1   : > { %8091 = vmatmul.mubr.msk.f32.gmra.mrb[26].mxu1 %vm225_vm1, %v10520_v60 }
 0x4c2   : > { %8093 = vmatprep.mubr.msk.f32.mxu1 %vm225_vm1, %v10524_v0 }
 0x4c5   : > { %8094 = vmatmul.mubr.msk.f32.gmra.mrb[28].mxu1 %vm225_vm1, %v10528_v33 }
 0x4c6   : > { %8096 = vmatprep.mubr.msk.f32.mxu1 %vm225_vm1, %v10532_v37 }
 0x4c9   : > { %8097 = vmatmul.mubr.msk.f32.gmra.mrb[30].mxu1 %vm225_vm1, %v10536_v58 }
 0x4ca   : > { %8101 = vmatprep.mubr.msk.f32.mxu1 %vm225_vm1, %v4962_v48 }
 0x4cd   : > { %8102 = vmatmul.mubr.msk.f32.vlgmr.msra.gmra.mrb[0].mxu1 %vm225_vm1, %v4963_v55 }
 0x4ce   : > { %8150 = vmatpush3.msk.msra.mxu1 %vm471_vm0, %v10420_v47  ;;  %8104 = vmatprep.mubr.msk.f32.mxu1 %vm225_vm1, %v10428_v56 }
 0x4d1   : > { %8105 = vmatmul.mubr.msk.f32.gmra.mrb[2].mxu1 %vm225_vm1, %v10432_v27 }
 0x4d2   : > { %8107 = vmatprep.mubr.msk.f32.mxu1 %vm225_vm1, %v10436_v30 }
 0x4d5   : > { %8108 = vmatmul.mubr.msk.f32.gmra.mrb[4].mxu1 %vm225_vm1, %v10440_v42 }
 0x4d6   : > { %8110 = vmatprep.mubr.msk.f32.mxu1 %vm225_vm1, %v10444_v43 }
 0x4d9   : > { %8111 = vmatmul.mubr.msk.f32.gmra.mrb[6].mxu1 %vm225_vm1, %v10448_v52 }
 0x4da   : > { %8113 = vmatprep.mubr.msk.f32.mxu1 %vm225_vm1, %v10452_v53 }
 0x4dd   : > { %8114 = vmatmul.mubr.msk.f32.gmra.mrb[8].mxu1 %vm225_vm1, %v10456_v2 }
 0x4de   : > { %8116 = vmatprep.mubr.msk.f32.mxu1 %vm225_vm1, %v10460_v31 }
 0x4e1   : > { %8117 = vmatmul.mubr.msk.f32.gmra.mrb[10].mxu1 %vm225_vm1, %v10464_v45 }
 0x4e2   : > { %8119 = vmatprep.mubr.msk.f32.mxu1 %vm225_vm1, %v10468_v46 }
 0x4e5   : > { %8120 = vmatmul.mubr.msk.f32.gmra.mrb[12].mxu1 %vm225_vm1, %v10472_v62 }
 0x4e6   : > { %8122 = vmatprep.mubr.msk.f32.mxu1 %vm225_vm1, %v10476_v63 }
 0x4e9   : > { %8123 = vmatmul.mubr.msk.f32.gmra.mrb[14].mxu1 %vm225_vm1, %v10480_v44 }
 0x4ea   : > { %8125 = vmatprep.mubr.msk.f32.mxu1 %vm225_vm1, %v10484_v49 }
 0x4ed   : > { %8126 = vmatmul.mubr.msk.f32.gmra.mrb[16].mxu1 %vm225_vm1, %v10488_v32 }
 0x4ee   : > { %8128 = vmatprep.mubr.msk.f32.mxu1 %vm225_vm1, %v10492_v34 }
 0x4f1   : > { %8129 = vmatmul.mubr.msk.f32.gmra.mrb[18].mxu1 %vm225_vm1, %v10496_v41 }
 0x4f2   : > { %8131 = vmatprep.mubr.msk.f32.mxu1 %vm225_vm1, %v10500_v50 }
 0x4f5   : > { %8132 = vmatmul.mubr.msk.f32.gmra.mrb[20].mxu1 %vm225_vm1, %v10504_v51 }
 0x4f6   : > { %8134 = vmatprep.mubr.msk.f32.mxu1 %vm225_vm1, %v10508_v1 }
 0x4f9   : > { %8135 = vmatmul.mubr.msk.f32.gmra.mrb[22].mxu1 %vm225_vm1, %v10512_v54 }
 0x4fa   : > { %8137 = vmatprep.mubr.msk.f32.mxu1 %vm225_vm1, %v10516_v57 }
 0x4fd   : > { %8138 = vmatmul.mubr.msk.f32.gmra.mrb[24].mxu1 %vm225_vm1, %v10520_v60 }
 0x4fe   : > { %8140 = vmatprep.mubr.msk.f32.mxu1 %vm225_vm1, %v10524_v0 }
 0x501   : > { %8141 = vmatmul.mubr.msk.f32.gmra.mrb[26].mxu1 %vm225_vm1, %v10528_v33 }
 0x502   : > { %8143 = vmatprep.mubr.msk.f32.mxu1 %vm225_vm1, %v10532_v37 }
 0x505   : > { %8144 = vmatmul.mubr.msk.f32.gmra.mrb[28].mxu1 %vm225_vm1, %v10536_v58 }
 0x506   : > { %8146 = vmatprep.mubr.msk.f32.mxu1 %vm225_vm1, %v4992_v59 }
 0x509   : > { %8147 = vmatmul.mubr.msk.f32.gmra.mrb[30].mxu1 %vm225_vm1, %v4993_v61 }
 0x50a   : > { %8151 = vmatprep.mubr.msk.f32.mxu1 %vm225_vm1, %v10428_v56 }
 0x50d   : > { %8152 = vmatmul.mubr.msk.f32.vlgmr.msra.gmra.mrb[0].mxu1 %vm225_vm1, %v10432_v27 }
 0x50e   : > { %8154 = vmatprep.mubr.msk.f32.mxu1 %vm225_vm1, %v10436_v30 }
 0x511   : > { %8155 = vmatmul.mubr.msk.f32.gmra.mrb[2].mxu1 %vm225_vm1, %v10440_v42 }
 0x512   : > { %8157 = vmatprep.mubr.msk.f32.mxu1 %vm225_vm1, %v10444_v43 }
 0x515   : > { %8158 = vmatmul.mubr.msk.f32.gmra.mrb[4].mxu1 %vm225_vm1, %v10448_v52 }
 0x516   : > { %8160 = vmatprep.mubr.msk.f32.mxu1 %vm225_vm1, %v10452_v53 }
 0x519   : > { %8161 = vmatmul.mubr.msk.f32.gmra.mrb[6].mxu1 %vm225_vm1, %v10456_v2 }
 0x51a   : > { %8163 = vmatprep.mubr.msk.f32.mxu1 %vm225_vm1, %v10460_v31 }
 0x51d   : > { %8164 = vmatmul.mubr.msk.f32.gmra.mrb[8].mxu1 %vm225_vm1, %v10464_v45 }
 0x51e   : > { %8166 = vmatprep.mubr.msk.f32.mxu1 %vm225_vm1, %v10468_v46 }
 0x521   : > { %8167 = vmatmul.mubr.msk.f32.gmra.mrb[10].mxu1 %vm225_vm1, %v10472_v62 }
 0x522   : > { %8169 = vmatprep.mubr.msk.f32.mxu1 %vm225_vm1, %v10476_v63 }
 0x525   : > { %8170 = vmatmul.mubr.msk.f32.gmra.mrb[12].mxu1 %vm225_vm1, %v10480_v44 }
 0x526   : > { %8172 = vmatprep.mubr.msk.f32.mxu1 %vm225_vm1, %v10484_v49 }
 0x529   : > { %8173 = vmatmul.mubr.msk.f32.gmra.mrb[14].mxu1 %vm225_vm1, %v10488_v32 }
 0x52a   : > { %8175 = vmatprep.mubr.msk.f32.mxu1 %vm225_vm1, %v10492_v34 }
 0x52d   : > { %8176 = vmatmul.mubr.msk.f32.gmra.mrb[16].mxu1 %vm225_vm1, %v10496_v41 }
 0x52e   : > { %8178 = vmatprep.mubr.msk.f32.mxu1 %vm225_vm1, %v10500_v50 }
 0x531   : > { %8179 = vmatmul.mubr.msk.f32.gmra.mrb[18].mxu1 %vm225_vm1, %v10504_v51 }
 0x532   : > { %8181 = vmatprep.mubr.msk.f32.mxu1 %vm225_vm1, %v10508_v1 }
 0x535   : > { %8182 = vmatmul.mubr.msk.f32.gmra.mrb[20].mxu1 %vm225_vm1, %v10512_v54 }
 0x536   : > { %8184 = vmatprep.mubr.msk.f32.mxu1 %vm225_vm1, %v10516_v57 }
 0x539   : > { %8185 = vmatmul.mubr.msk.f32.gmra.mrb[22].mxu1 %vm225_vm1, %v10520_v60 }
 0x53a   : > { %8187 = vmatprep.mubr.msk.f32.mxu1 %vm225_vm1, %v10524_v0 }
 0x53d   : > { %8188 = vmatmul.mubr.msk.f32.gmra.mrb[24].mxu1 %vm225_vm1, %v10528_v33 }
 0x53e   : > { %8190 = vmatprep.mubr.msk.f32.mxu1 %vm225_vm1, %v10532_v37 }
 0x541   : > { %8191 = vmatmul.mubr.msk.f32.gmra.mrb[26].mxu1 %vm225_vm1, %v10536_v58 }
 0x542   : > { %8193 = vmatprep.mubr.msk.f32.mxu1 %vm225_vm1, %v4992_v59 }
 0x545   : > { %8194 = vmatmul.mubr.msk.f32.gmra.mrb[28].mxu1 %vm225_vm1, %v4993_v61 }
 0x546   : > { %8196 = vmatprep.mubr.msk.f32.mxu1 %vm225_vm1, %v4994_v28 }
 0x549   : > { %8197 = vmatmul.mubr.msk.f32.gmra.mrb[30].mxu1 %vm225_vm1, %v4995_v29 }
 0x5e0   : > { %v8153_v40 = vpop.f32.mrb[0].mxu1 }
 0x5e1   : > { %v5898_v47 = vadd.f32 %v8153_v40, %v10665_v39  ;;  %v5699_v48 = vpop.f32.mrb[1].mxu1 }
 0x5e2   : > { %v5897_v55 = vadd.f32 %v10665_v39, %v5699_v48 }
 0x5e3   : > { %v5930_v56 = vadd.f32 %v5898_v47, %v8869_v4 }
 0x5e4   : > { %v5929_v27 = vadd.f32 %v5897_v55, %v8866_v3  ;;  %v8156_v30 = vpop.f32.mrb[2].mxu1 }
 0x5e5   : > { %v5962_v42 = vmax.f32 %v5930_v56, 0.0  ;;  %v5900_v43 = vadd.f32 %v8156_v30, %v10665_v39  ;;  %v5709_v52 = vpop.f32.mrb[3].mxu1 }
 0x5e6   : > { %v5961_v53 = vmax.f32 %v5929_v27, 0.0  ;;  %v5899_v4 = vadd.f32 %v10665_v39, %v5709_v52 }
 0x5e7   : > { %5994 = vst.msk [vmem:[%s10675_s21 + $0x8] sm:$0xff] %vm225_vm1, %v5962_v42  ;;  %v5932_v2 = vadd.f32 %v5900_v43, %v8881_v6 }
 0x5e8   : > { %5993 = vst.msk [vmem:[%s10675_s21] sm:$0xff] %vm225_vm1, %v5961_v53  ;;  %v5931_v31 = vadd.f32 %v5899_v4, %v8872_v5  ;;  %v8159_v45 = vpop.f32.mrb[4].mxu1 }
 0x5e9   : > { %v5964_v3 = vmax.f32 %v5932_v2, 0.0  ;;  %v5902_v46 = vadd.f32 %v8159_v45, %v10665_v39  ;;  %v5719_v62 = vpop.f32.mrb[5].mxu1 }
 0x5ea   : > { %v5963_v63 = vmax.f32 %v5931_v31, 0.0  ;;  %v5901_v44 = vadd.f32 %v10665_v39, %v5719_v62 }
 0x5eb   : > { %5996 = vst.msk [vmem:[%s10675_s21 + $0x18] sm:$0xff] %vm225_vm1, %v5964_v3  ;;  %v5934_v49 = vadd.f32 %v5902_v46, %v8887_v8 }
 0x5ec   : > { %5995 = vst.msk [vmem:[%s10675_s21 + $0x10] sm:$0xff] %vm225_vm1, %v5963_v63  ;;  %v5933_v6 = vadd.f32 %v5901_v44, %v8884_v7  ;;  %v8162_v32 = vpop.f32.mrb[6].mxu1 }
 0x5ed   : > { %v5966_v5 = vmax.f32 %v5934_v49, 0.0  ;;  %v5904_v34 = vadd.f32 %v8162_v32, %v10665_v39  ;;  %v5729_v41 = vpop.f32.mrb[7].mxu1 }
 0x5ee   : > { %v5965_v50 = vmax.f32 %v5933_v6, 0.0  ;;  %v5903_v51 = vadd.f32 %v10665_v39, %v5729_v41 }
 0x5ef   : > { %5998 = vst.msk [vmem:[%s10675_s21 + $0x28] sm:$0xff] %vm225_vm1, %v5966_v5  ;;  %v5936_v1 = vadd.f32 %v5904_v34, %v8899_v10 }
 0x5f0   : > { %5997 = vst.msk [vmem:[%s10675_s21 + $0x20] sm:$0xff] %vm225_vm1, %v5965_v50  ;;  %v5935_v8 = vadd.f32 %v5903_v51, %v8896_v9  ;;  %v8165_v54 = vpop.f32.mrb[8].mxu1 }
 0x5f1   : > { %v5968_v7 = vmax.f32 %v5936_v1, 0.0  ;;  %v5906_v57 = vadd.f32 %v8165_v54, %v10665_v39  ;;  %v5739_v60 = vpop.f32.mrb[9].mxu1 }
 0x5f2   : > { %v5967_v0 = vmax.f32 %v5935_v8, 0.0  ;;  %v5905_v33 = vadd.f32 %v10665_v39, %v5739_v60 }
 0x5f3   : > { %6000 = vst.msk [vmem:[%s10675_s21 + $0x38] sm:$0xff] %vm225_vm1, %v5968_v7  ;;  %v5938_v37 = vadd.f32 %v5906_v57, %v8911_v12 }
 0x5f4   : > { %5999 = vst.msk [vmem:[%s10675_s21 + $0x30] sm:$0xff] %vm225_vm1, %v5967_v0  ;;  %v5937_v10 = vadd.f32 %v5905_v33, %v8902_v11  ;;  %v8168_v58 = vpop.f32.mrb[10].mxu1 }
 0x5f5   : > { %v5970_v9 = vmax.f32 %v5938_v37, 0.0  ;;  %v5908_v59 = vadd.f32 %v8168_v58, %v10665_v39  ;;  %v5749_v61 = vpop.f32.mrb[11].mxu1 }
 0x5f6   : > { %v5969_v28 = vmax.f32 %v5937_v10, 0.0  ;;  %v5907_v29 = vadd.f32 %v10665_v39, %v5749_v61 }
 0x5f7   : > { %6002 = vst.msk [vmem:[%s10675_s21 + $0x48] sm:$0xff] %vm225_vm1, %v5970_v9  ;;  %v5940_v40 = vadd.f32 %v5908_v59, %v8917_v14 }
 0x5f8   : > { %6001 = vst.msk [vmem:[%s10675_s21 + $0x40] sm:$0xff] %vm225_vm1, %v5969_v28  ;;  %v5939_v12 = vadd.f32 %v5907_v29, %v8914_v13  ;;  %v8171_v47 = vpop.f32.mrb[12].mxu1 }
 0x5f9   : > { %v5972_v11 = vmax.f32 %v5940_v40, 0.0  ;;  %v5910_v48 = vadd.f32 %v8171_v47, %v10665_v39  ;;  %v5759_v55 = vpop.f32.mrb[13].mxu1 }
 0x5fa   : > { %v5971_v56 = vmax.f32 %v5939_v12, 0.0  ;;  %v5909_v27 = vadd.f32 %v10665_v39, %v5759_v55 }
 0x5fb   : > { %6004 = vst.msk [vmem:[%s10675_s21 + $0x58] sm:$0xff] %vm225_vm1, %v5972_v11  ;;  %v5942_v30 = vadd.f32 %v5910_v48, %v8929_v16 }
 0x5fc   : > { %6003 = vst.msk [vmem:[%s10675_s21 + $0x50] sm:$0xff] %vm225_vm1, %v5971_v56  ;;  %v5941_v14 = vadd.f32 %v5909_v27, %v8926_v15  ;;  %v8174_v42 = vpop.f32.mrb[14].mxu1 }
 0x5fd   : > { %v5974_v13 = vmax.f32 %v5942_v30, 0.0  ;;  %v5912_v43 = vadd.f32 %v8174_v42, %v10665_v39  ;;  %v5769_v52 = vpop.f32.mrb[15].mxu1 }
 0x5fe   : > { %v5973_v53 = vmax.f32 %v5941_v14, 0.0  ;;  %v5911_v4 = vadd.f32 %v10665_v39, %v5769_v52 }
 0x5ff   : > { %6006 = vst.msk [vmem:[%s10675_s21 + $0x68] sm:$0xff] %vm225_vm1, %v5974_v13  ;;  %v5944_v2 = vadd.f32 %v5912_v43, %v8941_v18  ;;  %v10825_v13 = vld [vmem:[#allocation5_spill] sm:$0xff] }
 0x600   : > { %6005 = vst.msk [vmem:[%s10675_s21 + $0x60] sm:$0xff] %vm225_vm1, %v5973_v53  ;;  %v5943_v16 = vadd.f32 %v5911_v4, %v8932_v17  ;;  %v8177_v31 = vpop.f32.mrb[16].mxu1 }
 0x601   : > { %v5976_v15 = vmax.f32 %v5944_v2, 0.0  ;;  %v5914_v45 = vadd.f32 %v8177_v31, %v10665_v39  ;;  %v5779_v3 = vpop.f32.mrb[17].mxu1 }
 0x602   : > { %v5975_v46 = vmax.f32 %v5943_v16, 0.0  ;;  %v5913_v62 = vadd.f32 %v10665_v39, %v5779_v3 }
 0x603   : > { %6008 = vst.msk [vmem:[%s10675_s21 + $0x78] sm:$0xff] %vm225_vm1, %v5976_v15  ;;  %v5946_v63 = vadd.f32 %v5914_v45, %v8947_v20  ;;  %v10827_v45 = vld [vmem:[#allocation7_spill] sm:$0xff] }
 0x604   : > { %6007 = vst.msk [vmem:[%s10675_s21 + $0x70] sm:$0xff] %vm225_vm1, %v5975_v46  ;;  %v5945_v18 = vadd.f32 %v5913_v62, %v8944_v19  ;;  %v8180_v44 = vpop.f32.mrb[18].mxu1  ;;  %v10828_v46 = vld [vmem:[#allocation6_spill] sm:$0xff] }
 0x605   : > { %v5978_v17 = vmax.f32 %v5946_v63, 0.0  ;;  %v5916_v49 = vadd.f32 %v8180_v44, %v10665_v39  ;;  %v5789_v6 = vpop.f32.mrb[19].mxu1 }
 0x606   : > { %v5977_v32 = vmax.f32 %v5945_v18, 0.0  ;;  %v5915_v5 = vadd.f32 %v10665_v39, %v5789_v6 }
 0x607   : > { %6010 = vst.msk [vmem:[%s10675_s21 + $0x88] sm:$0xff] %vm225_vm1, %v5978_v17  ;;  %v5948_v34 = vadd.f32 %v5916_v49, %v8959_v22 }
 0x608   : > { %6009 = vst.msk [vmem:[%s10675_s21 + $0x80] sm:$0xff] %vm225_vm1, %v5977_v32  ;;  %v5947_v20 = vadd.f32 %v5915_v5, %v8956_v21  ;;  %v8183_v41 = vpop.f32.mrb[20].mxu1 }
 0x609   : > { %v5980_v19 = vmax.f32 %v5948_v34, 0.0  ;;  %v5918_v50 = vadd.f32 %v8183_v41, %v10665_v39  ;;  %v5799_v51 = vpop.f32.mrb[21].mxu1 }
 0x60a   : > { %v5979_v1 = vmax.f32 %v5947_v20, 0.0  ;;  %v5917_v8 = vadd.f32 %v10665_v39, %v5799_v51 }
 0x60b   : > { %6012 = vst.msk [vmem:[%s10675_s21 + $0x98] sm:$0xff] %vm225_vm1, %v5980_v19  ;;  %v5950_v54 = vadd.f32 %v5918_v50, %v8971_v24 }
 0x60c   : > { %6011 = vst.msk [vmem:[%s10675_s21 + $0x90] sm:$0xff] %vm225_vm1, %v5979_v1  ;;  %v5949_v22 = vadd.f32 %v5917_v8, %v8962_v23  ;;  %v8186_v7 = vpop.f32.mrb[22].mxu1 }
 0x60d   : > { %v5982_v21 = vmax.f32 %v5950_v54, 0.0  ;;  %v5920_v57 = vadd.f32 %v8186_v7, %v10665_v39  ;;  %v5809_v60 = vpop.f32.mrb[23].mxu1 }
 0x60e   : > { %v5981_v0 = vmax.f32 %v5949_v22, 0.0  ;;  %v5919_v33 = vadd.f32 %v10665_v39, %v5809_v60 }
 0x60f   : > { %6014 = vst.msk [vmem:[%s10675_s21 + $0xa8] sm:$0xff] %vm225_vm1, %v5982_v21  ;;  %v5952_v37 = vadd.f32 %v5920_v57, %v8977_v26 }
 0x610   : > { %6013 = vst.msk [vmem:[%s10675_s21 + $0xa0] sm:$0xff] %vm225_vm1, %v5981_v0  ;;  %v5951_v24 = vadd.f32 %v5919_v33, %v8974_v25  ;;  %v8189_v10 = vpop.f32.mrb[24].mxu1 }
 0x611   : > { %v5984_v23 = vmax.f32 %v5952_v37, 0.0  ;;  %v5922_v58 = vadd.f32 %v8189_v10, %v10665_v39  ;;  %v5819_v9 = vpop.f32.mrb[25].mxu1 }
 0x612   : > { %v5983_v59 = vmax.f32 %v5951_v24, 0.0  ;;  %v5921_v61 = vadd.f32 %v10665_v39, %v5819_v9 }
 0x613   : > { %6016 = vst.msk [vmem:[%s10675_s21 + $0xb8] sm:$0xff] %vm225_vm1, %v5984_v23  ;;  %v5954_v28 = vadd.f32 %v5922_v58, %v9022_v36  ;;  %v10824_v36 = vld [vmem:[#allocation3_spill] sm:$0xff] }
 0x614   : > { %6015 = vst.msk [vmem:[%s10675_s21 + $0xb0] sm:$0xff] %vm225_vm1, %v5983_v59  ;;  %v5953_v26 = vadd.f32 %v5921_v61, %v9019_v35  ;;  %v8192_v29 = vpop.f32.mrb[26].mxu1 }
 0x615   : > { %v5986_v25 = vmax.f32 %v5954_v28, 0.0  ;;  %v5924_v40 = vadd.f32 %v8192_v29, %v10665_v39  ;;  %v5829_v12 = vpop.f32.mrb[27].mxu1 }
 0x616   : > { %v5985_v47 = vmax.f32 %v5953_v26, 0.0  ;;  %v5923_v11 = vadd.f32 %v10665_v39, %v5829_v12 }
 0x617   : > { %6018 = vst.msk [vmem:[%s10675_s21 + $0xc8] sm:$0xff] %vm225_vm1, %v5986_v25  ;;  %v5956_v48 = vadd.f32 %v5924_v40, %v9034_v38  ;;  %v10826_v38 = vld [vmem:[#allocation4_spill] sm:$0xff] }
 0x618   : > { %6017 = vst.msk [vmem:[%s10675_s21 + $0xc0] sm:$0xff] %vm225_vm1, %v5985_v47  ;;  %v5955_v55 = vadd.f32 %v5923_v11, %v10824_v36  ;;  %v8195_v56 = vpop.f32.mrb[28].mxu1 }
 0x619   : > { %v5988_v35 = vmax.f32 %v5956_v48, 0.0  ;;  %v5926_v27 = vadd.f32 %v8195_v56, %v10665_v39  ;;  %v5839_v30 = vpop.f32.mrb[29].mxu1 }
 0x61a   : > { %v5987_v14 = vmax.f32 %v5955_v55, 0.0  ;;  %v5925_v42 = vadd.f32 %v10665_v39, %v5839_v30 }
 0x61b   : > { %6020 = vst.msk [vmem:[%s10675_s21 + $0xd8] sm:$0xff] %vm225_vm1, %v5988_v35  ;;  %v5958_v43 = vadd.f32 %v5926_v27, %v10825_v13 }
 0x61c   : > { %6019 = vst.msk [vmem:[%s10675_s21 + $0xd0] sm:$0xff] %vm225_vm1, %v5987_v14  ;;  %v5957_v52 = vadd.f32 %v5925_v42, %v10826_v38  ;;  %v8198_v53 = vpop.f32.mrb[30].mxu1 }
 0x61d   : > { %v5990_v4 = vmax.f32 %v5958_v43, 0.0  ;;  %v5928_v2 = vadd.f32 %v8198_v53, %v10665_v39  ;;  %v5849_v16 = vpop.f32.mrb[31].mxu1 }
 0x61e   : > { %v5989_v31 = vmax.f32 %v5957_v52, 0.0  ;;  %v5927_v15 = vadd.f32 %v10665_v39, %v5849_v16 }
 0x61f   : > { %6022 = vst.msk [vmem:[%s10675_s21 + $0xe8] sm:$0xff] %vm225_vm1, %v5990_v4  ;;  %v5960_v3 = vadd.f32 %v5928_v2, %v10827_v45 }
 0x620   : > { %6021 = vst.msk [vmem:[%s10675_s21 + $0xe0] sm:$0xff] %vm225_vm1, %v5989_v31  ;;  %v5959_v62 = vadd.f32 %v5927_v15, %v10828_v46 }
 0x621   : > { %v5992_v63 = vmax.f32 %v5960_v3, 0.0 }
 0x622   : > { %v5991_v18 = vmax.f32 %v5959_v62, 0.0 }
 0x623   : > { %6024 = vst.msk [vmem:[%s10675_s21 + $0xf8] sm:$0xff] %vm225_vm1, %v5992_v63 }
 0x624   : > { %6023 = vst.msk [vmem:[%s10675_s21 + $0xf0] sm:$0xff] %vm225_vm1, %v5991_v18 }
 0x625 PF: > { %s15_s18 = sadd.s32 1, %s8726_s18  }
 0x626   : > { %p12_p4 = scmp.ge.s32.totalorder %s15_s18, 4  }
 0x628   :  { %14 = sbr.rel (!%p12_p4) target bundleno = 1 (0x1), region = 88 }

</bundles_post_ra>
